<compile_context>
chip_gen: v7x
topology: tpu7x:2x2x1
jax: 0.10.0
libtpu: 0.0.40
codegen_flags: <defaults>
</compile_context>

<pallas_src>
import jax
import jax.numpy as jnp
from jax.experimental import pallas as pl
from jax.experimental.pallas import tpu as pltpu


# MXU operand dtype.  Accumulation is always f32 (preferred_element_type).
MXU_DTYPE = jnp.bfloat16


def _silu(y):
    return y * jax.nn.sigmoid(y)


def _dot(a, b):
    """2-D matmul on the MXU: bf16 operands, f32 accumulation."""
    return jax.lax.dot_general(
        a.astype(MXU_DTYPE), b.astype(MXU_DTYPE),
        dimension_numbers=(((1,), (0,)), ((), ())),
        preferred_element_type=jnp.float32)


def _border_masks(H, W):
    """(9, H*W) f32 masks, index kh*3+kw, zero where the tap leaves the image."""
    HW = H * W
    pos = jnp.arange(HW, dtype=jnp.int32)
    row = pos // W
    col = pos % W
    rows = []
    for dh in (-1, 0, 1):
        for dw in (-1, 0, 1):
            ok = ((row + dh >= 0) & (row + dh < H) &
                  (col + dw >= 0) & (col + dw < W))
            rows.append(ok.astype(jnp.float32))
    return jnp.stack(rows, axis=0)


# ---------------------------------------------------------------------------
# Fused C2fAttn kernel (per-batch grid step).  All tensors are (channels, H*W).
# ---------------------------------------------------------------------------
def _build_c2f_attn_kernel(*, n, nh, hc, H, W):
    HW = H * W
    c = nh * hc

    def kernel(*refs):
        out_ref = refs[-1]
        it = iter(refs[:-1])

        x_ref = next(it)               # (1, C1, HW)
        guide_ref = next(it)           # (1, Nt, gc)
        masks_ref = next(it)           # (9, HW) f32, precomputed on host
        cv1_w = next(it)[...]          # (2c, C1)  bf16, BN scale pre-folded
        cv1_b = next(it)[...]          # (2c, 1)   f32
        m_par = [(next(it)[...], next(it)[...], next(it)[...], next(it)[...])
                 for _ in range(n)]    # per bottleneck: (w1, b1, w2, b2)
        proj_w = next(it)[...]         # (c, 9c)   bf16
        proj_b = next(it)[...]         # (c, 1)    f32
        gl_w = next(it)[...]           # (gc, ec)  bf16
        gl_b = next(it)[...]           # (1, ec)   f32
        attn_b = next(it)[...]         # (nh, 1)   f32
        cv2_wy = next(it)[...]         # (C2, 2c)  bf16, split-K pieces of cv2
        cv2_wm = [next(it)[...] for _ in range(n)]   # (C2, c) each
        cv2_wa = next(it)[...]         # (C2, c)
        cv2_b = next(it)[...]          # (C2, 1)   f32

        x = x_ref[0]                   # (C1, HW)
        g = guide_ref[0]               # (Nt, gc)
        masks = masks_ref[...]         # (9, HW)

        def conv1x1(inp, w, b, act):
            y = _dot(w, inp) + b
            return _silu(y) if act else y

        def conv3x3(inp, wf, b, act):
            # im2col in 3 row-chunks (K = 3*Cin per MXU push), accumulated in
            # f32.  Transient "patches" buffer is 1/3 of the single-shot
            # 9*Cin contraction; arithmetic is identical.
            cin = inp.shape[0]
            acc = None
            for kh in range(3):
                dh = kh - 1
                pieces = []
                for kw in range(3):
                    dw = kw - 1
                    if dh == 0 and dw == 0:
                        pieces.append(inp)
                        continue
                    s = (-(dh * W + dw)) % HW
                    shifted = pltpu.roll(inp, shift=s, axis=1)
                    mi = kh * 3 + kw
                    pieces.append(shifted * masks[mi:mi + 1, :])
                patch = jnp.concatenate(pieces, axis=0)            # (3*cin, HW)
                part = _dot(wf[:, kh * 3 * cin:(kh + 1) * 3 * cin], patch)
                acc = part if acc is None else acc + part
            ycv = acc + b
            return _silu(ycv) if act else ycv

        # ---- cv1 (1x1 Conv+BN+SiLU); chunk(2, channel) == row halves ----
        y = conv1x1(x, cv1_w, cv1_b, act=True)          # (2c, HW)
        cur = y[c:, :]                                  # second chunk

        # ---- cv2 split-K accumulation starts immediately (eager) ----
        acc = _dot(cv2_wy, y) + cv2_b                   # covers y0 ++ y1

        # ---- Bottleneck chain (shortcut=False -> no residual add) ----
        for (w1, b1, w2, b2), wm in zip(m_par, cv2_wm):
            t = conv3x3(cur, w1, b1, act=True)
            cur = conv3x3(t, w2, b2, act=True)
            acc = acc + _dot(wm, cur)                   # accumulate, drop cur's copy

        # ---- MaxSigmoidAttnBlock (ec == c -> embed = cur directly) ----
        ge = _dot(g, gl_w) + gl_b                       # (Nt, ec) f32
        xproj = conv3x3(cur, proj_w, proj_b, act=False)  # (c, HW)
        inv_sqrt_hc = 1.0 / (hc ** 0.5)
        if nh == 1:
            s = _dot(ge, cur)                           # (Nt, HW), single push
            aw = jax.nn.sigmoid(jnp.max(s, axis=0, keepdims=True) * inv_sqrt_hc
                                + attn_b[0:1, :])       # scale == 1.0
            attn_out = xproj * aw
        else:
            # One MXU push for all heads: block-diagonal guide (nh*Nt, c).
            Nt = ge.shape[0]
            rh = jax.lax.broadcasted_iota(jnp.int32, (nh * Nt, c), 0) // Nt
            ch = jax.lax.broadcasted_iota(jnp.int32, (nh * Nt, c), 1) // hc
            gmask = (rh == ch).astype(ge.dtype)
            g_blk = jnp.concatenate([ge] * nh, axis=0) * gmask
            s_all = _dot(g_blk, cur)                    # (nh*Nt, HW)
            head_outs = []
            for m in range(nh):
                s_m = s_all[m * Nt:(m + 1) * Nt, :]
                aw = jax.nn.sigmoid(jnp.max(s_m, axis=0, keepdims=True) * inv_sqrt_hc
                                    + attn_b[m:m + 1, :])
                head_outs.append(xproj[m * hc:(m + 1) * hc, :] * aw)
            attn_out = jnp.concatenate(head_outs, axis=0)

        acc = acc + _dot(cv2_wa, attn_out)
        out_ref[0] = _silu(acc).astype(out_ref.dtype)

    return kernel


# ---------------------------------------------------------------------------
# Parameter prep: fold BN scale into weights (then cast matmul weights to the
# MXU dtype), lay out channels-first, split cv2 weights per branch (split-K).
# ---------------------------------------------------------------------------
def prep_params(p, cfg):
    c, n = cfg["c"], cfg["n"]

    def w1x1(w2d, s):                       # (Cin, Cout) -> (Cout, Cin)
        return jnp.transpose(w2d * s[None, :], (1, 0)).astype(MXU_DTYPE)

    def w3x3(w, s):                         # (3,3,Cin,Cout) -> (Cout, 9*Cin)
        w = w * s[None, None, None, :]
        cout = w.shape[-1]
        return jnp.transpose(w, (3, 0, 1, 2)).reshape(cout, -1).astype(MXU_DTYPE)

    q = {"cv1_w": w1x1(p["cv1_w"], p["cv1_s"]),
         "cv1_b": p["cv1_b"].reshape(-1, 1)}
    for i in range(n):
        q[f"m{i}_cv1_w"] = w3x3(p[f"m{i}_cv1_w"], p[f"m{i}_cv1_s"])
        q[f"m{i}_cv1_b"] = p[f"m{i}_cv1_b"].reshape(-1, 1)
        q[f"m{i}_cv2_w"] = w3x3(p[f"m{i}_cv2_w"], p[f"m{i}_cv2_s"])
        q[f"m{i}_cv2_b"] = p[f"m{i}_cv2_b"].reshape(-1, 1)
    q["proj_w"] = w3x3(p["proj_w"], p["proj_s"])
    q["proj_b"] = p["proj_b"].reshape(-1, 1)
    q["gl_w"] = p["gl_w"].astype(MXU_DTYPE)
    q["gl_b"] = p["gl_b"].reshape(1, -1)
    q["attn_bias"] = p["attn_bias"].reshape(-1, 1)           # (nh, 1)
    w2 = jnp.transpose(p["cv2_w"] * p["cv2_s"][None, :], (1, 0)).astype(MXU_DTYPE)
    q["cv2_wy"] = w2[:, :2 * c]
    for i in range(n):
        q[f"cv2_wm{i}"] = w2[:, 2 * c + i * c: 2 * c + (i + 1) * c]
    q["cv2_wa"] = w2[:, (2 + n) * c:]
    q["cv2_b"] = p["cv2_b"].reshape(-1, 1)
    return q


def c2f_attn_forward(x_nchw, guide, p, cfg):
    c, n, nh, hc = cfg["c"], cfg["n"], cfg["nh"], cfg["hc"]
    B, C1, H, W = x_nchw.shape
    HW = H * W
    Nt, gc = guide.shape[1], guide.shape[2]
    C2 = p["cv2_b"].shape[0]

    q = prep_params(p, cfg)
    masks = _border_masks(H, W)            # (9, HW) f32, built once on host
    x2d = x_nchw.reshape(B, C1, HW)        # NCHW -> (B, C, H*W): pure reshape

    weights = [q["cv1_w"], q["cv1_b"]]
    for i in range(n):
        weights += [q[f"m{i}_cv1_w"], q[f"m{i}_cv1_b"],
                    q[f"m{i}_cv2_w"], q[f"m{i}_cv2_b"]]
    weights += [q["proj_w"], q["proj_b"], q["gl_w"], q["gl_b"],
                q["attn_bias"], q["cv2_wy"]]
    weights += [q[f"cv2_wm{i}"] for i in range(n)]
    weights += [q["cv2_wa"], q["cv2_b"]]

    def full_spec(a):
        nd = a.ndim
        return pl.BlockSpec(a.shape, lambda b, _nd=nd: (0,) * _nd)

    in_specs = [pl.BlockSpec((1, C1, HW), lambda b: (b, 0, 0)),
                pl.BlockSpec((1, Nt, gc), lambda b: (b, 0, 0)),
                full_spec(masks)]
    in_specs += [full_spec(a) for a in weights]

    kernel = _build_c2f_attn_kernel(n=n, nh=nh, hc=hc, H=H, W=W)

    # VMEM budget from actual tile/weight sizes (double-buffered I/O + weights
    # + live f32 intermediates), clamped below v7x's 64 MiB physical VMEM.
    weight_bytes = sum(int(a.size) * a.dtype.itemsize for a in weights)
    weight_bytes += int(masks.size) * 4
    io_bytes = (C1 * HW + Nt * gc + C2 * HW) * 4
    inter_bytes = HW * 4 * (2 * c + 4 * c + 2 * C2 + 3 * max(C1, c))
    est = 2 * (io_bytes + weight_bytes) + 2 * inter_bytes
    vmem_limit = int(min(max(est, 16 * 1024 * 1024), 48 * 1024 * 1024))

    out2d = pl.pallas_call(
        kernel,
        out_shape=jax.ShapeDtypeStruct((B, C2, HW), jnp.float32),
        grid_spec=pltpu.PrefetchScalarGridSpec(
            num_scalar_prefetch=0,
            grid=(B,),
            in_specs=in_specs,
            out_specs=pl.BlockSpec((1, C2, HW), lambda b: (b, 0, 0)),
        ),
        compiler_params=pltpu.CompilerParams(
            dimension_semantics=("parallel",),
            vmem_limit_bytes=vmem_limit,
        ),
    )(x2d, guide, masks, *weights)

    return out2d.reshape(B, C2, H, W)


# ---------------------------------------------------------------------------
# Pure-JAX reference (correctness check only; f32 HIGHEST precision)
# ---------------------------------------------------------------------------
def _conv_ref(x, w, s, b, act, pad):
    y = jax.lax.conv_general_dilated(
        x, w, (1, 1), pad,
        dimension_numbers=("NHWC", "HWIO", "NHWC"),
        precision=jax.lax.Precision.HIGHEST)
    y = y * s + b
    return _silu(y) if act else y


def c2f_attn_reference(x_nchw, guide, p, cfg):
    c, n, nh, hc = cfg["c"], cfg["n"], cfg["nh"], cfg["hc"]
    x = jnp.transpose(x_nchw, (0, 2, 3, 1))
    cin = x.shape[-1]
    y = _conv_ref(x, p["cv1_w"].reshape(1, 1, cin, 2 * c), p["cv1_s"], p["cv1_b"],
                  True, "VALID")
    ys = [y[..., :c], y[..., c:]]
    cur = ys[-1]
    for i in range(n):
        t = _conv_ref(cur, p[f"m{i}_cv1_w"], p[f"m{i}_cv1_s"], p[f"m{i}_cv1_b"],
                      True, ((1, 1), (1, 1)))
        cur = _conv_ref(t, p[f"m{i}_cv2_w"], p[f"m{i}_cv2_s"], p[f"m{i}_cv2_b"],
                        True, ((1, 1), (1, 1)))
        ys.append(cur)

    B, H, W, C = cur.shape
    ge = jnp.einsum("bng,ge->bne", guide, p["gl_w"],
                    precision=jax.lax.Precision.HIGHEST) + p["gl_b"]
    ge = ge.reshape(B, -1, nh, hc)
    emb = cur.reshape(B, H, W, nh, hc)
    aw = jnp.einsum("bhwmc,bnmc->bmhwn", emb, ge,
                    precision=jax.lax.Precision.HIGHEST)
    aw = aw.max(axis=-1) / (hc ** 0.5) + p["attn_bias"][None, :, None, None]
    aw = jax.nn.sigmoid(aw) * 1.0
    xp = _conv_ref(cur, p["proj_w"], p["proj_s"], p["proj_b"], False, ((1, 1), (1, 1)))
    xp = xp.reshape(B, H, W, nh, hc)
    attn_out = (xp * jnp.transpose(aw, (0, 2, 3, 1))[..., None]).reshape(B, H, W, C)
    ys.append(attn_out)

    ycat = jnp.concatenate(ys, axis=-1)
    out = _conv_ref(ycat, p["cv2_w"].reshape(1, 1, ycat.shape[-1], -1),
                    p["cv2_s"], p["cv2_b"], True, "VALID")
    return jnp.transpose(out, (0, 3, 1, 2))


# ---------------------------------------------------------------------------
# Deterministic parameters (Conv weight + folded BatchNorm stats)
# ---------------------------------------------------------------------------
def conv_bn_params(key, cin, cout, k):
    kw_, kg, kb, km, kv = jax.random.split(key, 5)
    fan_in = cin * k * k
    w = jax.random.normal(kw_, (k, k, cin, cout), jnp.float32) / jnp.sqrt(fan_in)
    gamma = 1.0 + 0.1 * jax.random.normal(kg, (cout,), jnp.float32)
    beta = 0.1 * jax.random.normal(kb, (cout,), jnp.float32)
    mean = 0.1 * jax.random.normal(km, (cout,), jnp.float32)
    var = 1.0 + 0.1 * jax.random.uniform(kv, (cout,), jnp.float32)
    eps = 1e-3
    scale = gamma / jnp.sqrt(var + eps)
    bias = beta - mean * scale
    return w, scale, bias


if __name__ == "__main__":
    # Module config: C2fAttn(c1=16, c2=16, n=1, ec=8, nh=1, gc=32, e=0.5)
    B, C1, H, W = 2, 16, 16, 16
    C2 = 16
    n = 1
    e = 0.5
    c = int(C2 * e)          # 8 hidden channels
    nh = 1
    hc = c // nh             # 8
    ec = c                   # ec == c -> attn.ec conv is None (as in PyTorch)
    gc = 32
    Nt = 8                   # number of text/guide tokens

    key = jax.random.PRNGKey(0)
    keys = jax.random.split(key, 12)

    params = {}
    w, s, b = conv_bn_params(keys[0], C1, 2 * c, 1)
    params.update(cv1_w=w.reshape(C1, 2 * c), cv1_s=s, cv1_b=b)
    w, s, b = conv_bn_params(keys[1], c, c, 3)
    params.update(m0_cv1_w=w, m0_cv1_s=s, m0_cv1_b=b)
    w, s, b = conv_bn_params(keys[2], c, c, 3)
    params.update(m0_cv2_w=w, m0_cv2_s=s, m0_cv2_b=b)
    w, s, b = conv_bn_params(keys[3], c, c, 3)          # attn.proj_conv (act=False)
    params.update(proj_w=w, proj_s=s, proj_b=b)
    params["gl_w"] = jax.random.normal(keys[4], (gc, ec), jnp.float32) / jnp.sqrt(gc)
    params["gl_b"] = 0.1 * jax.random.normal(keys[5], (ec,), jnp.float32)
    params["attn_bias"] = jnp.zeros((nh,), jnp.float32)  # nn.Parameter(torch.zeros(nh))
    w, s, b = conv_bn_params(keys[6], (3 + n) * c, C2, 1)
    params.update(cv2_w=w.reshape((3 + n) * c, C2), cv2_s=s, cv2_b=b)

    x = jax.random.normal(keys[7], (B, C1, H, W), jnp.float32)
    guide = jax.random.normal(keys[8], (B, Nt, gc), jnp.float32)

    cfg = dict(c=c, n=n, nh=nh, hc=hc)

    out = jax.block_until_ready(c2f_attn_forward(x, guide, params, cfg))
    ref = jax.block_until_ready(c2f_attn_reference(x, guide, params, cfg))

    # Tolerance accounts for bf16 MXU operands vs. the HIGHEST-precision f32
    # reference (real bugs produce errors comparable to the output magnitude).
    max_err = float(jnp.max(jnp.abs(out - ref)))
    ref_mag = float(jnp.max(jnp.abs(ref)))
    tol = 1e-1 * max(1.0, ref_mag)
    if out.shape != (B, C2, H, W) or not (max_err < tol):
        raise AssertionError(f"mismatch: shape={out.shape}, max_abs_err={max_err}")

    print("KERNEL_OK")
</pallas_src>

<mosaic_0001>
module attributes {stable_mosaic.version = 11 : i64} {
  func.func @kernel(%arg0: i32, %arg1: memref<1x16x256xf32, #tpu.memory_space<vmem>>, %arg2: memref<1x8x32xf32, #tpu.memory_space<vmem>>, %arg3: memref<9x256xf32, #tpu.memory_space<vmem>>, %arg4: memref<16x16xbf16, #tpu.memory_space<vmem>>, %arg5: memref<16x1xf32, #tpu.memory_space<vmem>>, %arg6: memref<8x72xbf16, #tpu.memory_space<vmem>>, %arg7: memref<8x1xf32, #tpu.memory_space<vmem>>, %arg8: memref<8x72xbf16, #tpu.memory_space<vmem>>, %arg9: memref<8x1xf32, #tpu.memory_space<vmem>>, %arg10: memref<8x72xbf16, #tpu.memory_space<vmem>>, %arg11: memref<8x1xf32, #tpu.memory_space<vmem>>, %arg12: memref<32x8xbf16, #tpu.memory_space<vmem>>, %arg13: memref<1x8xf32, #tpu.memory_space<vmem>>, %arg14: memref<1x1xf32, #tpu.memory_space<vmem>>, %arg15: memref<16x16xbf16, #tpu.memory_space<vmem>>, %arg16: memref<16x8xbf16, #tpu.memory_space<vmem>>, %arg17: memref<16x8xbf16, #tpu.memory_space<vmem>>, %arg18: memref<16x1xf32, #tpu.memory_space<vmem>>, %arg19: memref<1x16x256xf32, #tpu.memory_space<vmem>>) attributes {dimension_semantics = [#tpu.dimension_semantics<parallel>], iteration_bounds = array<i64: 2>, scalar_prefetch = 0 : i64, scratch_operands = 0 : i64, tpu.core_type = #tpu.core_type<tc>, window_params = [{transform_indices = @transform_0, window_bounds = array<i64: 1, 16, 256>}, {transform_indices = @transform_1, window_bounds = array<i64: 1, 8, 32>}, {pipeline_mode = #tpu.pipeline_mode<synchronous>, transform_indices = @transform_2, window_bounds = array<i64: 9, 256>}, {pipeline_mode = #tpu.pipeline_mode<synchronous>, transform_indices = @transform_3, window_bounds = array<i64: 16, 16>}, {pipeline_mode = #tpu.pipeline_mode<synchronous>, transform_indices = @transform_4, window_bounds = array<i64: 16, 1>}, {pipeline_mode = #tpu.pipeline_mode<synchronous>, transform_indices = @transform_5, window_bounds = array<i64: 8, 72>}, {pipeline_mode = #tpu.pipeline_mode<synchronous>, transform_indices = @transform_6, window_bounds = array<i64: 8, 1>}, {pipeline_mode = #tpu.pipeline_mode<synchronous>, transform_indices = @transform_7, window_bounds = array<i64: 8, 72>}, {pipeline_mode = #tpu.pipeline_mode<synchronous>, transform_indices = @transform_8, window_bounds = array<i64: 8, 1>}, {pipeline_mode = #tpu.pipeline_mode<synchronous>, transform_indices = @transform_9, window_bounds = array<i64: 8, 72>}, {pipeline_mode = #tpu.pipeline_mode<synchronous>, transform_indices = @transform_10, window_bounds = array<i64: 8, 1>}, {pipeline_mode = #tpu.pipeline_mode<synchronous>, transform_indices = @transform_11, window_bounds = array<i64: 32, 8>}, {pipeline_mode = #tpu.pipeline_mode<synchronous>, transform_indices = @transform_12, window_bounds = array<i64: 1, 8>}, {pipeline_mode = #tpu.pipeline_mode<synchronous>, transform_indices = @transform_13, window_bounds = array<i64: 1, 1>}, {pipeline_mode = #tpu.pipeline_mode<synchronous>, transform_indices = @transform_14, window_bounds = array<i64: 16, 16>}, {pipeline_mode = #tpu.pipeline_mode<synchronous>, transform_indices = @transform_15, window_bounds = array<i64: 16, 8>}, {pipeline_mode = #tpu.pipeline_mode<synchronous>, transform_indices = @transform_16, window_bounds = array<i64: 16, 8>}, {pipeline_mode = #tpu.pipeline_mode<synchronous>, transform_indices = @transform_17, window_bounds = array<i64: 16, 1>}, {transform_indices = @transform_18, window_bounds = array<i64: 1, 16, 256>}]} {
    %c0 = arith.constant 0 : index
    %c0_0 = arith.constant 0 : index
    %0 = vector.load %arg4[%c0, %c0_0] : memref<16x16xbf16, #tpu.memory_space<vmem>>, vector<16x16xbf16>
    %c0_1 = arith.constant 0 : index
    %c0_2 = arith.constant 0 : index
    %1 = vector.load %arg5[%c0_1, %c0_2] : memref<16x1xf32, #tpu.memory_space<vmem>>, vector<16x1xf32>
    %c0_3 = arith.constant 0 : index
    %c0_4 = arith.constant 0 : index
    %2 = vector.load %arg6[%c0_3, %c0_4] : memref<8x72xbf16, #tpu.memory_space<vmem>>, vector<8x72xbf16>
    %c0_5 = arith.constant 0 : index
    %c0_6 = arith.constant 0 : index
    %3 = vector.load %arg7[%c0_5, %c0_6] : memref<8x1xf32, #tpu.memory_space<vmem>>, vector<8x1xf32>
    %c0_7 = arith.constant 0 : index
    %c0_8 = arith.constant 0 : index
    %4 = vector.load %arg8[%c0_7, %c0_8] : memref<8x72xbf16, #tpu.memory_space<vmem>>, vector<8x72xbf16>
    %c0_9 = arith.constant 0 : index
    %c0_10 = arith.constant 0 : index
    %5 = vector.load %arg9[%c0_9, %c0_10] : memref<8x1xf32, #tpu.memory_space<vmem>>, vector<8x1xf32>
    %c0_11 = arith.constant 0 : index
    %c0_12 = arith.constant 0 : index
    %6 = vector.load %arg10[%c0_11, %c0_12] : memref<8x72xbf16, #tpu.memory_space<vmem>>, vector<8x72xbf16>
    %c0_13 = arith.constant 0 : index
    %c0_14 = arith.constant 0 : index
    %7 = vector.load %arg11[%c0_13, %c0_14] : memref<8x1xf32, #tpu.memory_space<vmem>>, vector<8x1xf32>
    %c0_15 = arith.constant 0 : index
    %c0_16 = arith.constant 0 : index
    %8 = vector.load %arg12[%c0_15, %c0_16] : memref<32x8xbf16, #tpu.memory_space<vmem>>, vector<32x8xbf16>
    %c0_17 = arith.constant 0 : index
    %c0_18 = arith.constant 0 : index
    %9 = vector.load %arg13[%c0_17, %c0_18] : memref<1x8xf32, #tpu.memory_space<vmem>>, vector<1x8xf32>
    %c0_19 = arith.constant 0 : index
    %c0_20 = arith.constant 0 : index
    %10 = vector.load %arg14[%c0_19, %c0_20] : memref<1x1xf32, #tpu.memory_space<vmem>>, vector<1x1xf32>
    %c0_21 = arith.constant 0 : index
    %c0_22 = arith.constant 0 : index
    %11 = vector.load %arg15[%c0_21, %c0_22] : memref<16x16xbf16, #tpu.memory_space<vmem>>, vector<16x16xbf16>
    %c0_23 = arith.constant 0 : index
    %c0_24 = arith.constant 0 : index
    %12 = vector.load %arg16[%c0_23, %c0_24] : memref<16x8xbf16, #tpu.memory_space<vmem>>, vector<16x8xbf16>
    %c0_25 = arith.constant 0 : index
    %c0_26 = arith.constant 0 : index
    %13 = vector.load %arg17[%c0_25, %c0_26] : memref<16x8xbf16, #tpu.memory_space<vmem>>, vector<16x8xbf16>
    %c0_27 = arith.constant 0 : index
    %c0_28 = arith.constant 0 : index
    %14 = vector.load %arg18[%c0_27, %c0_28] : memref<16x1xf32, #tpu.memory_space<vmem>>, vector<16x1xf32>
    %c0_29 = arith.constant 0 : index
    %c0_30 = arith.constant 0 : index
    %c0_31 = arith.constant 0 : index
    %15 = vector.load %arg1[%c0_29, %c0_30, %c0_31] : memref<1x16x256xf32, #tpu.memory_space<vmem>>, vector<1x16x256xf32>
    %16 = vector.shape_cast %15 : vector<1x16x256xf32> to vector<16x256xf32>
    %c0_32 = arith.constant 0 : index
    %c0_33 = arith.constant 0 : index
    %c0_34 = arith.constant 0 : index
    %17 = vector.load %arg2[%c0_32, %c0_33, %c0_34] : memref<1x8x32xf32, #tpu.memory_space<vmem>>, vector<1x8x32xf32>
    %18 = vector.shape_cast %17 : vector<1x8x32xf32> to vector<8x32xf32>
    %c0_35 = arith.constant 0 : index
    %c0_36 = arith.constant 0 : index
    %19 = vector.load %arg3[%c0_35, %c0_36] : memref<9x256xf32, #tpu.memory_space<vmem>>, vector<9x256xf32>
    %20 = arith.truncf %16 : vector<16x256xf32> to vector<16x256xbf16>
    %cst = arith.constant dense<0.000000e+00> : vector<16x256xf32>
    %21 = tpu.matmul %0, %20, %cst {dimension_numbers = #tpu.dot_dimension_numbers<[1], [0], [0], [1], [0, 0, 1, 1], [], []>} : vector<16x16xbf16>, vector<16x256xbf16>, vector<16x256xf32> -> vector<16x256xf32>
    %22 = vector.broadcast %1 : vector<16x1xf32> to vector<16x256xf32>
    %23 = arith.addf %21, %22 : vector<16x256xf32>
    %24 = arith.negf %23 : vector<16x256xf32>
    %25 = math.exp %24 : vector<16x256xf32>
    %cst_37 = arith.constant 1.000000e+00 : f32
    %26 = vector.broadcast %cst_37 : f32 to vector<16x256xf32>
    %27 = arith.addf %26, %25 : vector<16x256xf32>
    %28 = arith.divf %26, %27 : vector<16x256xf32>
    %29 = arith.mulf %23, %28 : vector<16x256xf32>
    %30 = vector.extract_strided_slice %29 {offsets = [8, 0], sizes = [8, 256], strides = [1, 1]} : vector<16x256xf32> to vector<8x256xf32>
    %31 = arith.truncf %29 : vector<16x256xf32> to vector<16x256xbf16>
    %cst_38 = arith.constant dense<0.000000e+00> : vector<16x256xf32>
    %32 = tpu.matmul %11, %31, %cst_38 {dimension_numbers = #tpu.dot_dimension_numbers<[1], [0], [0], [1], [0, 0, 1, 1], [], []>} : vector<16x16xbf16>, vector<16x256xbf16>, vector<16x256xf32> -> vector<16x256xf32>
    %33 = vector.broadcast %14 : vector<16x1xf32> to vector<16x256xf32>
    %34 = arith.addf %32, %33 : vector<16x256xf32>
    %c17_i32 = arith.constant 17 : i32
    %35 = tpu.dynamic_rotate %30 by %c17_i32 dim 1 : vector<8x256xf32>, i32 -> vector<8x256xf32>
    %36 = vector.extract_strided_slice %19 {offsets = [0, 0], sizes = [1, 256], strides = [1, 1]} : vector<9x256xf32> to vector<1x256xf32>
    %37 = vector.broadcast %36 : vector<1x256xf32> to vector<8x256xf32>
    %38 = arith.mulf %35, %37 : vector<8x256xf32>
    %c16_i32 = arith.constant 16 : i32
    %39 = tpu.dynamic_rotate %30 by %c16_i32 dim 1 : vector<8x256xf32>, i32 -> vector<8x256xf32>
    %40 = vector.extract_strided_slice %19 {offsets = [1, 0], sizes = [1, 256], strides = [1, 1]} : vector<9x256xf32> to vector<1x256xf32>
    %41 = vector.broadcast %40 : vector<1x256xf32> to vector<8x256xf32>
    %42 = arith.mulf %39, %41 : vector<8x256xf32>
    %c15_i32 = arith.constant 15 : i32
    %43 = tpu.dynamic_rotate %30 by %c15_i32 dim 1 : vector<8x256xf32>, i32 -> vector<8x256xf32>
    %44 = vector.extract_strided_slice %19 {offsets = [2, 0], sizes = [1, 256], strides = [1, 1]} : vector<9x256xf32> to vector<1x256xf32>
    %45 = vector.broadcast %44 : vector<1x256xf32> to vector<8x256xf32>
    %46 = arith.mulf %43, %45 : vector<8x256xf32>
    %47 = tpu.concatenate %38, %42, %46 in 0 : vector<8x256xf32>, vector<8x256xf32>, vector<8x256xf32> -> vector<24x256xf32>
    %48 = vector.extract_strided_slice %2 {offsets = [0, 0], sizes = [8, 24], strides = [1, 1]} : vector<8x72xbf16> to vector<8x24xbf16>
    %49 = arith.truncf %47 : vector<24x256xf32> to vector<24x256xbf16>
    %cst_39 = arith.constant dense<0.000000e+00> : vector<8x256xf32>
    %50 = tpu.matmul %48, %49, %cst_39 {dimension_numbers = #tpu.dot_dimension_numbers<[1], [0], [0], [1], [0, 0, 1, 1], [], []>} : vector<8x24xbf16>, vector<24x256xbf16>, vector<8x256xf32> -> vector<8x256xf32>
    %c1_i32 = arith.constant 1 : i32
    %51 = tpu.dynamic_rotate %30 by %c1_i32 dim 1 : vector<8x256xf32>, i32 -> vector<8x256xf32>
    %52 = vector.extract_strided_slice %19 {offsets = [3, 0], sizes = [1, 256], strides = [1, 1]} : vector<9x256xf32> to vector<1x256xf32>
    %53 = vector.broadcast %52 : vector<1x256xf32> to vector<8x256xf32>
    %54 = arith.mulf %51, %53 : vector<8x256xf32>
    %c255_i32 = arith.constant 255 : i32
    %55 = tpu.dynamic_rotate %30 by %c255_i32 dim 1 : vector<8x256xf32>, i32 -> vector<8x256xf32>
    %56 = vector.extract_strided_slice %19 {offsets = [5, 0], sizes = [1, 256], strides = [1, 1]} : vector<9x256xf32> to vector<1x256xf32>
    %57 = vector.broadcast %56 : vector<1x256xf32> to vector<8x256xf32>
    %58 = arith.mulf %55, %57 : vector<8x256xf32>
    %59 = tpu.concatenate %54, %30, %58 in 0 : vector<8x256xf32>, vector<8x256xf32>, vector<8x256xf32> -> vector<24x256xf32>
    %60 = vector.extract_strided_slice %2 {offsets = [0, 24], sizes = [8, 24], strides = [1, 1]} : vector<8x72xbf16> to vector<8x24xbf16>
    %61 = arith.truncf %59 : vector<24x256xf32> to vector<24x256xbf16>
    %cst_40 = arith.constant dense<0.000000e+00> : vector<8x256xf32>
    %62 = tpu.matmul %60, %61, %cst_40 {dimension_numbers = #tpu.dot_dimension_numbers<[1], [0], [0], [1], [0, 0, 1, 1], [], []>} : vector<8x24xbf16>, vector<24x256xbf16>, vector<8x256xf32> -> vector<8x256xf32>
    %63 = arith.addf %50, %62 : vector<8x256xf32>
    %c241_i32 = arith.constant 241 : i32
    %64 = tpu.dynamic_rotate %30 by %c241_i32 dim 1 : vector<8x256xf32>, i32 -> vector<8x256xf32>
    %65 = vector.extract_strided_slice %19 {offsets = [6, 0], sizes = [1, 256], strides = [1, 1]} : vector<9x256xf32> to vector<1x256xf32>
    %66 = vector.broadcast %65 : vector<1x256xf32> to vector<8x256xf32>
    %67 = arith.mulf %64, %66 : vector<8x256xf32>
    %c240_i32 = arith.constant 240 : i32
    %68 = tpu.dynamic_rotate %30 by %c240_i32 dim 1 : vector<8x256xf32>, i32 -> vector<8x256xf32>
    %69 = vector.extract_strided_slice %19 {offsets = [7, 0], sizes = [1, 256], strides = [1, 1]} : vector<9x256xf32> to vector<1x256xf32>
    %70 = vector.broadcast %69 : vector<1x256xf32> to vector<8x256xf32>
    %71 = arith.mulf %68, %70 : vector<8x256xf32>
    %c239_i32 = arith.constant 239 : i32
    %72 = tpu.dynamic_rotate %30 by %c239_i32 dim 1 : vector<8x256xf32>, i32 -> vector<8x256xf32>
    %73 = vector.extract_strided_slice %19 {offsets = [8, 0], sizes = [1, 256], strides = [1, 1]} : vector<9x256xf32> to vector<1x256xf32>
    %74 = vector.broadcast %73 : vector<1x256xf32> to vector<8x256xf32>
    %75 = arith.mulf %72, %74 : vector<8x256xf32>
    %76 = tpu.concatenate %67, %71, %75 in 0 : vector<8x256xf32>, vector<8x256xf32>, vector<8x256xf32> -> vector<24x256xf32>
    %77 = vector.extract_strided_slice %2 {offsets = [0, 48], sizes = [8, 24], strides = [1, 1]} : vector<8x72xbf16> to vector<8x24xbf16>
    %78 = arith.truncf %76 : vector<24x256xf32> to vector<24x256xbf16>
    %cst_41 = arith.constant dense<0.000000e+00> : vector<8x256xf32>
    %79 = tpu.matmul %77, %78, %cst_41 {dimension_numbers = #tpu.dot_dimension_numbers<[1], [0], [0], [1], [0, 0, 1, 1], [], []>} : vector<8x24xbf16>, vector<24x256xbf16>, vector<8x256xf32> -> vector<8x256xf32>
    %80 = arith.addf %63, %79 : vector<8x256xf32>
    %81 = vector.broadcast %3 : vector<8x1xf32> to vector<8x256xf32>
    %82 = arith.addf %80, %81 : vector<8x256xf32>
    %83 = arith.negf %82 : vector<8x256xf32>
    %84 = math.exp %83 : vector<8x256xf32>
    %cst_42 = arith.constant 1.000000e+00 : f32
    %85 = vector.broadcast %cst_42 : f32 to vector<8x256xf32>
    %86 = arith.addf %85, %84 : vector<8x256xf32>
    %87 = arith.divf %85, %86 : vector<8x256xf32>
    %88 = arith.mulf %82, %87 : vector<8x256xf32>
    %c17_i32_43 = arith.constant 17 : i32
    %89 = tpu.dynamic_rotate %88 by %c17_i32_43 dim 1 : vector<8x256xf32>, i32 -> vector<8x256xf32>
    %90 = vector.extract_strided_slice %19 {offsets = [0, 0], sizes = [1, 256], strides = [1, 1]} : vector<9x256xf32> to vector<1x256xf32>
    %91 = vector.broadcast %90 : vector<1x256xf32> to vector<8x256xf32>
    %92 = arith.mulf %89, %91 : vector<8x256xf32>
    %c16_i32_44 = arith.constant 16 : i32
    %93 = tpu.dynamic_rotate %88 by %c16_i32_44 dim 1 : vector<8x256xf32>, i32 -> vector<8x256xf32>
    %94 = vector.extract_strided_slice %19 {offsets = [1, 0], sizes = [1, 256], strides = [1, 1]} : vector<9x256xf32> to vector<1x256xf32>
    %95 = vector.broadcast %94 : vector<1x256xf32> to vector<8x256xf32>
    %96 = arith.mulf %93, %95 : vector<8x256xf32>
    %c15_i32_45 = arith.constant 15 : i32
    %97 = tpu.dynamic_rotate %88 by %c15_i32_45 dim 1 : vector<8x256xf32>, i32 -> vector<8x256xf32>
    %98 = vector.extract_strided_slice %19 {offsets = [2, 0], sizes = [1, 256], strides = [1, 1]} : vector<9x256xf32> to vector<1x256xf32>
    %99 = vector.broadcast %98 : vector<1x256xf32> to vector<8x256xf32>
    %100 = arith.mulf %97, %99 : vector<8x256xf32>
    %101 = tpu.concatenate %92, %96, %100 in 0 : vector<8x256xf32>, vector<8x256xf32>, vector<8x256xf32> -> vector<24x256xf32>
    %102 = vector.extract_strided_slice %4 {offsets = [0, 0], sizes = [8, 24], strides = [1, 1]} : vector<8x72xbf16> to vector<8x24xbf16>
    %103 = arith.truncf %101 : vector<24x256xf32> to vector<24x256xbf16>
    %cst_46 = arith.constant dense<0.000000e+00> : vector<8x256xf32>
    %104 = tpu.matmul %102, %103, %cst_46 {dimension_numbers = #tpu.dot_dimension_numbers<[1], [0], [0], [1], [0, 0, 1, 1], [], []>} : vector<8x24xbf16>, vector<24x256xbf16>, vector<8x256xf32> -> vector<8x256xf32>
    %c1_i32_47 = arith.constant 1 : i32
    %105 = tpu.dynamic_rotate %88 by %c1_i32_47 dim 1 : vector<8x256xf32>, i32 -> vector<8x256xf32>
    %106 = vector.extract_strided_slice %19 {offsets = [3, 0], sizes = [1, 256], strides = [1, 1]} : vector<9x256xf32> to vector<1x256xf32>
    %107 = vector.broadcast %106 : vector<1x256xf32> to vector<8x256xf32>
    %108 = arith.mulf %105, %107 : vector<8x256xf32>
    %c255_i32_48 = arith.constant 255 : i32
    %109 = tpu.dynamic_rotate %88 by %c255_i32_48 dim 1 : vector<8x256xf32>, i32 -> vector<8x256xf32>
    %110 = vector.extract_strided_slice %19 {offsets = [5, 0], sizes = [1, 256], strides = [1, 1]} : vector<9x256xf32> to vector<1x256xf32>
    %111 = vector.broadcast %110 : vector<1x256xf32> to vector<8x256xf32>
    %112 = arith.mulf %109, %111 : vector<8x256xf32>
    %113 = tpu.concatenate %108, %88, %112 in 0 : vector<8x256xf32>, vector<8x256xf32>, vector<8x256xf32> -> vector<24x256xf32>
    %114 = vector.extract_strided_slice %4 {offsets = [0, 24], sizes = [8, 24], strides = [1, 1]} : vector<8x72xbf16> to vector<8x24xbf16>
    %115 = arith.truncf %113 : vector<24x256xf32> to vector<24x256xbf16>
    %cst_49 = arith.constant dense<0.000000e+00> : vector<8x256xf32>
    %116 = tpu.matmul %114, %115, %cst_49 {dimension_numbers = #tpu.dot_dimension_numbers<[1], [0], [0], [1], [0, 0, 1, 1], [], []>} : vector<8x24xbf16>, vector<24x256xbf16>, vector<8x256xf32> -> vector<8x256xf32>
    %117 = arith.addf %104, %116 : vector<8x256xf32>
    %c241_i32_50 = arith.constant 241 : i32
    %118 = tpu.dynamic_rotate %88 by %c241_i32_50 dim 1 : vector<8x256xf32>, i32 -> vector<8x256xf32>
    %119 = vector.extract_strided_slice %19 {offsets = [6, 0], sizes = [1, 256], strides = [1, 1]} : vector<9x256xf32> to vector<1x256xf32>
    %120 = vector.broadcast %119 : vector<1x256xf32> to vector<8x256xf32>
    %121 = arith.mulf %118, %120 : vector<8x256xf32>
    %c240_i32_51 = arith.constant 240 : i32
    %122 = tpu.dynamic_rotate %88 by %c240_i32_51 dim 1 : vector<8x256xf32>, i32 -> vector<8x256xf32>
    %123 = vector.extract_strided_slice %19 {offsets = [7, 0], sizes = [1, 256], strides = [1, 1]} : vector<9x256xf32> to vector<1x256xf32>
    %124 = vector.broadcast %123 : vector<1x256xf32> to vector<8x256xf32>
    %125 = arith.mulf %122, %124 : vector<8x256xf32>
    %c239_i32_52 = arith.constant 239 : i32
    %126 = tpu.dynamic_rotate %88 by %c239_i32_52 dim 1 : vector<8x256xf32>, i32 -> vector<8x256xf32>
    %127 = vector.extract_strided_slice %19 {offsets = [8, 0], sizes = [1, 256], strides = [1, 1]} : vector<9x256xf32> to vector<1x256xf32>
    %128 = vector.broadcast %127 : vector<1x256xf32> to vector<8x256xf32>
    %129 = arith.mulf %126, %128 : vector<8x256xf32>
    %130 = tpu.concatenate %121, %125, %129 in 0 : vector<8x256xf32>, vector<8x256xf32>, vector<8x256xf32> -> vector<24x256xf32>
    %131 = vector.extract_strided_slice %4 {offsets = [0, 48], sizes = [8, 24], strides = [1, 1]} : vector<8x72xbf16> to vector<8x24xbf16>
    %132 = arith.truncf %130 : vector<24x256xf32> to vector<24x256xbf16>
    %cst_53 = arith.constant dense<0.000000e+00> : vector<8x256xf32>
    %133 = tpu.matmul %131, %132, %cst_53 {dimension_numbers = #tpu.dot_dimension_numbers<[1], [0], [0], [1], [0, 0, 1, 1], [], []>} : vector<8x24xbf16>, vector<24x256xbf16>, vector<8x256xf32> -> vector<8x256xf32>
    %134 = arith.addf %117, %133 : vector<8x256xf32>
    %135 = vector.broadcast %5 : vector<8x1xf32> to vector<8x256xf32>
    %136 = arith.addf %134, %135 : vector<8x256xf32>
    %137 = arith.negf %136 : vector<8x256xf32>
    %138 = math.exp %137 : vector<8x256xf32>
    %cst_54 = arith.constant 1.000000e+00 : f32
    %139 = vector.broadcast %cst_54 : f32 to vector<8x256xf32>
    %140 = arith.addf %139, %138 : vector<8x256xf32>
    %141 = arith.divf %139, %140 : vector<8x256xf32>
    %142 = arith.mulf %136, %141 : vector<8x256xf32>
    %143 = arith.truncf %142 : vector<8x256xf32> to vector<8x256xbf16>
    %cst_55 = arith.constant dense<0.000000e+00> : vector<16x256xf32>
    %144 = tpu.matmul %12, %143, %cst_55 {dimension_numbers = #tpu.dot_dimension_numbers<[1], [0], [0], [1], [0, 0, 1, 1], [], []>} : vector<16x8xbf16>, vector<8x256xbf16>, vector<16x256xf32> -> vector<16x256xf32>
    %145 = arith.addf %34, %144 : vector<16x256xf32>
    %146 = arith.truncf %18 : vector<8x32xf32> to vector<8x32xbf16>
    %cst_56 = arith.constant dense<0.000000e+00> : vector<8x8xf32>
    %147 = tpu.matmul %146, %8, %cst_56 {dimension_numbers = #tpu.dot_dimension_numbers<[1], [0], [0], [1], [0, 0, 1, 1], [], []>} : vector<8x32xbf16>, vector<32x8xbf16>, vector<8x8xf32> -> vector<8x8xf32>
    %148 = vector.broadcast %9 : vector<1x8xf32> to vector<8x8xf32>
    %149 = arith.addf %147, %148 : vector<8x8xf32>
    %c17_i32_57 = arith.constant 17 : i32
    %150 = tpu.dynamic_rotate %142 by %c17_i32_57 dim 1 : vector<8x256xf32>, i32 -> vector<8x256xf32>
    %151 = vector.extract_strided_slice %19 {offsets = [0, 0], sizes = [1, 256], strides = [1, 1]} : vector<9x256xf32> to vector<1x256xf32>
    %152 = vector.broadcast %151 : vector<1x256xf32> to vector<8x256xf32>
    %153 = arith.mulf %150, %152 : vector<8x256xf32>
    %c16_i32_58 = arith.constant 16 : i32
    %154 = tpu.dynamic_rotate %142 by %c16_i32_58 dim 1 : vector<8x256xf32>, i32 -> vector<8x256xf32>
    %155 = vector.extract_strided_slice %19 {offsets = [1, 0], sizes = [1, 256], strides = [1, 1]} : vector<9x256xf32> to vector<1x256xf32>
    %156 = vector.broadcast %155 : vector<1x256xf32> to vector<8x256xf32>
    %157 = arith.mulf %154, %156 : vector<8x256xf32>
    %c15_i32_59 = arith.constant 15 : i32
    %158 = tpu.dynamic_rotate %142 by %c15_i32_59 dim 1 : vector<8x256xf32>, i32 -> vector<8x256xf32>
    %159 = vector.extract_strided_slice %19 {offsets = [2, 0], sizes = [1, 256], strides = [1, 1]} : vector<9x256xf32> to vector<1x256xf32>
    %160 = vector.broadcast %159 : vector<1x256xf32> to vector<8x256xf32>
    %161 = arith.mulf %158, %160 : vector<8x256xf32>
    %162 = tpu.concatenate %153, %157, %161 in 0 : vector<8x256xf32>, vector<8x256xf32>, vector<8x256xf32> -> vector<24x256xf32>
    %163 = vector.extract_strided_slice %6 {offsets = [0, 0], sizes = [8, 24], strides = [1, 1]} : vector<8x72xbf16> to vector<8x24xbf16>
    %164 = arith.truncf %162 : vector<24x256xf32> to vector<24x256xbf16>
    %cst_60 = arith.constant dense<0.000000e+00> : vector<8x256xf32>
    %165 = tpu.matmul %163, %164, %cst_60 {dimension_numbers = #tpu.dot_dimension_numbers<[1], [0], [0], [1], [0, 0, 1, 1], [], []>} : vector<8x24xbf16>, vector<24x256xbf16>, vector<8x256xf32> -> vector<8x256xf32>
    %c1_i32_61 = arith.constant 1 : i32
    %166 = tpu.dynamic_rotate %142 by %c1_i32_61 dim 1 : vector<8x256xf32>, i32 -> vector<8x256xf32>
    %167 = vector.extract_strided_slice %19 {offsets = [3, 0], sizes = [1, 256], strides = [1, 1]} : vector<9x256xf32> to vector<1x256xf32>
    %168 = vector.broadcast %167 : vector<1x256xf32> to vector<8x256xf32>
    %169 = arith.mulf %166, %168 : vector<8x256xf32>
    %c255_i32_62 = arith.constant 255 : i32
    %170 = tpu.dynamic_rotate %142 by %c255_i32_62 dim 1 : vector<8x256xf32>, i32 -> vector<8x256xf32>
    %171 = vector.extract_strided_slice %19 {offsets = [5, 0], sizes = [1, 256], strides = [1, 1]} : vector<9x256xf32> to vector<1x256xf32>
    %172 = vector.broadcast %171 : vector<1x256xf32> to vector<8x256xf32>
    %173 = arith.mulf %170, %172 : vector<8x256xf32>
    %174 = tpu.concatenate %169, %142, %173 in 0 : vector<8x256xf32>, vector<8x256xf32>, vector<8x256xf32> -> vector<24x256xf32>
    %175 = vector.extract_strided_slice %6 {offsets = [0, 24], sizes = [8, 24], strides = [1, 1]} : vector<8x72xbf16> to vector<8x24xbf16>
    %176 = arith.truncf %174 : vector<24x256xf32> to vector<24x256xbf16>
    %cst_63 = arith.constant dense<0.000000e+00> : vector<8x256xf32>
    %177 = tpu.matmul %175, %176, %cst_63 {dimension_numbers = #tpu.dot_dimension_numbers<[1], [0], [0], [1], [0, 0, 1, 1], [], []>} : vector<8x24xbf16>, vector<24x256xbf16>, vector<8x256xf32> -> vector<8x256xf32>
    %178 = arith.addf %165, %177 : vector<8x256xf32>
    %c241_i32_64 = arith.constant 241 : i32
    %179 = tpu.dynamic_rotate %142 by %c241_i32_64 dim 1 : vector<8x256xf32>, i32 -> vector<8x256xf32>
    %180 = vector.extract_strided_slice %19 {offsets = [6, 0], sizes = [1, 256], strides = [1, 1]} : vector<9x256xf32> to vector<1x256xf32>
    %181 = vector.broadcast %180 : vector<1x256xf32> to vector<8x256xf32>
    %182 = arith.mulf %179, %181 : vector<8x256xf32>
    %c240_i32_65 = arith.constant 240 : i32
    %183 = tpu.dynamic_rotate %142 by %c240_i32_65 dim 1 : vector<8x256xf32>, i32 -> vector<8x256xf32>
    %184 = vector.extract_strided_slice %19 {offsets = [7, 0], sizes = [1, 256], strides = [1, 1]} : vector<9x256xf32> to vector<1x256xf32>
    %185 = vector.broadcast %184 : vector<1x256xf32> to vector<8x256xf32>
    %186 = arith.mulf %183, %185 : vector<8x256xf32>
    %c239_i32_66 = arith.constant 239 : i32
    %187 = tpu.dynamic_rotate %142 by %c239_i32_66 dim 1 : vector<8x256xf32>, i32 -> vector<8x256xf32>
    %188 = vector.extract_strided_slice %19 {offsets = [8, 0], sizes = [1, 256], strides = [1, 1]} : vector<9x256xf32> to vector<1x256xf32>
    %189 = vector.broadcast %188 : vector<1x256xf32> to vector<8x256xf32>
    %190 = arith.mulf %187, %189 : vector<8x256xf32>
    %191 = tpu.concatenate %182, %186, %190 in 0 : vector<8x256xf32>, vector<8x256xf32>, vector<8x256xf32> -> vector<24x256xf32>
    %192 = vector.extract_strided_slice %6 {offsets = [0, 48], sizes = [8, 24], strides = [1, 1]} : vector<8x72xbf16> to vector<8x24xbf16>
    %193 = arith.truncf %191 : vector<24x256xf32> to vector<24x256xbf16>
    %cst_67 = arith.constant dense<0.000000e+00> : vector<8x256xf32>
    %194 = tpu.matmul %192, %193, %cst_67 {dimension_numbers = #tpu.dot_dimension_numbers<[1], [0], [0], [1], [0, 0, 1, 1], [], []>} : vector<8x24xbf16>, vector<24x256xbf16>, vector<8x256xf32> -> vector<8x256xf32>
    %195 = arith.addf %178, %194 : vector<8x256xf32>
    %196 = vector.broadcast %7 : vector<8x1xf32> to vector<8x256xf32>
    %197 = arith.addf %195, %196 : vector<8x256xf32>
    %198 = arith.truncf %149 : vector<8x8xf32> to vector<8x8xbf16>
    %199 = arith.truncf %142 : vector<8x256xf32> to vector<8x256xbf16>
    %cst_68 = arith.constant dense<0.000000e+00> : vector<8x256xf32>
    %200 = tpu.matmul %198, %199, %cst_68 {dimension_numbers = #tpu.dot_dimension_numbers<[1], [0], [0], [1], [0, 0, 1, 1], [], []>} : vector<8x8xbf16>, vector<8x256xbf16>, vector<8x256xf32> -> vector<8x256xf32>
    %cst_69 = arith.constant dense<0xFF800000> : vector<256xf32>
    %201 = vector.multi_reduction <maximumf>, %200, %cst_69 [0] : vector<8x256xf32> to vector<256xf32>
    %202 = vector.shape_cast %201 : vector<256xf32> to vector<1x256xf32>
    %cst_70 = arith.constant 0.353553385 : f32
    %203 = vector.broadcast %cst_70 : f32 to vector<1x256xf32>
    %204 = arith.mulf %202, %203 : vector<1x256xf32>
    %205 = vector.broadcast %10 : vector<1x1xf32> to vector<1x256xf32>
    %206 = arith.addf %204, %205 : vector<1x256xf32>
    %207 = arith.negf %206 : vector<1x256xf32>
    %208 = math.exp %207 : vector<1x256xf32>
    %cst_71 = arith.constant 1.000000e+00 : f32
    %209 = vector.broadcast %cst_71 : f32 to vector<1x256xf32>
    %210 = arith.addf %209, %208 : vector<1x256xf32>
    %211 = arith.divf %209, %210 : vector<1x256xf32>
    %212 = vector.broadcast %211 : vector<1x256xf32> to vector<8x256xf32>
    %213 = arith.mulf %197, %212 : vector<8x256xf32>
    %214 = arith.truncf %213 : vector<8x256xf32> to vector<8x256xbf16>
    %cst_72 = arith.constant dense<0.000000e+00> : vector<16x256xf32>
    %215 = tpu.matmul %13, %214, %cst_72 {dimension_numbers = #tpu.dot_dimension_numbers<[1], [0], [0], [1], [0, 0, 1, 1], [], []>} : vector<16x8xbf16>, vector<8x256xbf16>, vector<16x256xf32> -> vector<16x256xf32>
    %216 = arith.addf %145, %215 : vector<16x256xf32>
    %217 = arith.negf %216 : vector<16x256xf32>
    %218 = math.exp %217 : vector<16x256xf32>
    %cst_73 = arith.constant 1.000000e+00 : f32
    %219 = vector.broadcast %cst_73 : f32 to vector<16x256xf32>
    %220 = arith.addf %219, %218 : vector<16x256xf32>
    %221 = arith.divf %219, %220 : vector<16x256xf32>
    %222 = arith.mulf %216, %221 : vector<16x256xf32>
    %c0_74 = arith.constant 0 : index
    %c0_75 = arith.constant 0 : index
    %c0_76 = arith.constant 0 : index
    %223 = vector.load %arg19[%c0_74, %c0_75, %c0_76] : memref<1x16x256xf32, #tpu.memory_space<vmem>>, vector<1x16x256xf32>
    %224 = vector.shape_cast %223 : vector<1x16x256xf32> to vector<16x256xf32>
    %225 = vector.shape_cast %222 : vector<16x256xf32> to vector<1x16x256xf32>
    tpu.vector_store %arg19[%c0_74, %c0_75, %c0_76], %225 {strides = array<i32>} : memref<1x16x256xf32, #tpu.memory_space<vmem>>, vector<1x16x256xf32>,
    return
  }
  func.func @transform_0(%arg0: i32) -> (i32, i32, i32) {
    %c0_i32 = arith.constant 0 : i32
    %c0_i32_0 = arith.constant 0 : i32
    %c0_i32_1 = arith.constant 0 : i32
    return %arg0, %c0_i32, %c0_i32_0 : i32, i32, i32
  }
  func.func @transform_1(%arg0: i32) -> (i32, i32, i32) {
    %c0_i32 = arith.constant 0 : i32
    %c0_i32_0 = arith.constant 0 : i32
    %c0_i32_1 = arith.constant 0 : i32
    return %arg0, %c0_i32, %c0_i32_0 : i32, i32, i32
  }
  func.func @transform_2(%arg0: i32) -> (i32, i32) {
    %c0_i32 = arith.constant 0 : i32
    %c0_i32_0 = arith.constant 0 : i32
    %c0_i32_1 = arith.constant 0 : i32
    return %c0_i32, %c0_i32_0 : i32, i32
  }
  func.func @transform_3(%arg0: i32) -> (i32, i32) {
    %c0_i32 = arith.constant 0 : i32
    %c0_i32_0 = arith.constant 0 : i32
    %c0_i32_1 = arith.constant 0 : i32
    return %c0_i32, %c0_i32_0 : i32, i32
  }
  func.func @transform_4(%arg0: i32) -> (i32, i32) {
    %c0_i32 = arith.constant 0 : i32
    %c0_i32_0 = arith.constant 0 : i32
    %c0_i32_1 = arith.constant 0 : i32
    return %c0_i32, %c0_i32_0 : i32, i32
  }
  func.func @transform_5(%arg0: i32) -> (i32, i32) {
    %c0_i32 = arith.constant 0 : i32
    %c0_i32_0 = arith.constant 0 : i32
    %c0_i32_1 = arith.constant 0 : i32
    return %c0_i32, %c0_i32_0 : i32, i32
  }
  func.func @transform_6(%arg0: i32) -> (i32, i32) {
    %c0_i32 = arith.constant 0 : i32
    %c0_i32_0 = arith.constant 0 : i32
    %c0_i32_1 = arith.constant 0 : i32
    return %c0_i32, %c0_i32_0 : i32, i32
  }
  func.func @transform_7(%arg0: i32) -> (i32, i32) {
    %c0_i32 = arith.constant 0 : i32
    %c0_i32_0 = arith.constant 0 : i32
    %c0_i32_1 = arith.constant 0 : i32
    return %c0_i32, %c0_i32_0 : i32, i32
  }
  func.func @transform_8(%arg0: i32) -> (i32, i32) {
    %c0_i32 = arith.constant 0 : i32
    %c0_i32_0 = arith.constant 0 : i32
    %c0_i32_1 = arith.constant 0 : i32
    return %c0_i32, %c0_i32_0 : i32, i32
  }
  func.func @transform_9(%arg0: i32) -> (i32, i32) {
    %c0_i32 = arith.constant 0 : i32
    %c0_i32_0 = arith.constant 0 : i32
    %c0_i32_1 = arith.constant 0 : i32
    return %c0_i32, %c0_i32_0 : i32, i32
  }
  func.func @transform_10(%arg0: i32) -> (i32, i32) {
    %c0_i32 = arith.constant 0 : i32
    %c0_i32_0 = arith.constant 0 : i32
    %c0_i32_1 = arith.constant 0 : i32
    return %c0_i32, %c0_i32_0 : i32, i32
  }
  func.func @transform_11(%arg0: i32) -> (i32, i32) {
    %c0_i32 = arith.constant 0 : i32
    %c0_i32_0 = arith.constant 0 : i32
    %c0_i32_1 = arith.constant 0 : i32
    return %c0_i32, %c0_i32_0 : i32, i32
  }
  func.func @transform_12(%arg0: i32) -> (i32, i32) {
    %c0_i32 = arith.constant 0 : i32
    %c0_i32_0 = arith.constant 0 : i32
    %c0_i32_1 = arith.constant 0 : i32
    return %c0_i32, %c0_i32_0 : i32, i32
  }
  func.func @transform_13(%arg0: i32) -> (i32, i32) {
    %c0_i32 = arith.constant 0 : i32
    %c0_i32_0 = arith.constant 0 : i32
    %c0_i32_1 = arith.constant 0 : i32
    return %c0_i32, %c0_i32_0 : i32, i32
  }
  func.func @transform_14(%arg0: i32) -> (i32, i32) {
    %c0_i32 = arith.constant 0 : i32
    %c0_i32_0 = arith.constant 0 : i32
    %c0_i32_1 = arith.constant 0 : i32
    return %c0_i32, %c0_i32_0 : i32, i32
  }
  func.func @transform_15(%arg0: i32) -> (i32, i32) {
    %c0_i32 = arith.constant 0 : i32
    %c0_i32_0 = arith.constant 0 : i32
    %c0_i32_1 = arith.constant 0 : i32
    return %c0_i32, %c0_i32_0 : i32, i32
  }
  func.func @transform_16(%arg0: i32) -> (i32, i32) {
    %c0_i32 = arith.constant 0 : i32
    %c0_i32_0 = arith.constant 0 : i32
    %c0_i32_1 = arith.constant 0 : i32
    return %c0_i32, %c0_i32_0 : i32, i32
  }
  func.func @transform_17(%arg0: i32) -> (i32, i32) {
    %c0_i32 = arith.constant 0 : i32
    %c0_i32_0 = arith.constant 0 : i32
    %c0_i32_1 = arith.constant 0 : i32
    return %c0_i32, %c0_i32_0 : i32, i32
  }
  func.func @transform_18(%arg0: i32) -> (i32, i32, i32) {
    %c0_i32 = arith.constant 0 : i32
    %c0_i32_0 = arith.constant 0 : i32
    %c0_i32_1 = arith.constant 0 : i32
    return %arg0, %c0_i32, %c0_i32_0 : i32, i32, i32
  }
}

</mosaic_0001>

<bundles_post_ra>
// kernel: tpu_custom_call.1
= control target key start
LH: loop header
LB: loop body
LE: loop exit
PB: predicated region body
PF: predicated region fallthrough
CT: control target
= control target key end

     0   :  { %s3067_s0 = inlined_call_operand.vmem [shape: f32[2,16,256], index: 0, kind: input, shape index: {}]   ;;  %s3068_s1 = inlined_call_operand.vmem [shape: f32[2,8,32], index: 1, kind: input, shape index: {}]   ;;  %s3069_s2 = inlined_call_operand.vmem [shape: f32[9,256], index: 2, kind: input, shape index: {}]   ;;  %s3070_s3 = inlined_call_operand.vmem [shape: bf16[16,16], index: 3, kind: input, shape index: {}]   ;;  %s3071_s4 = inlined_call_operand.vmem [shape: f32[16,1], index: 4, kind: input, shape index: {}]   ;;  %s3072_s5 = inlined_call_operand.hbm [shape: bf16[8,72], index: 5, kind: input, shape index: {}]   ;;  %s3073_s6 = inlined_call_operand.vmem [shape: f32[8,1], index: 6, kind: input, shape index: {}]   ;;  %s3074_s7 = inlined_call_operand.vmem [shape: bf16[8,72], index: 7, kind: input, shape index: {}]   ;;  %s3075_s8 = inlined_call_operand.vmem [shape: f32[8,1], index: 8, kind: input, shape index: {}]   ;;  %s3076_s9 = inlined_call_operand.vmem [shape: bf16[8,72], index: 9, kind: input, shape index: {}]   ;;  %s3077_s10 = inlined_call_operand.vmem [shape: f32[8,1], index: 10, kind: input, shape index: {}]   ;;  %s3078_s11 = inlined_call_operand.vmem [shape: bf16[32,8], index: 11, kind: input, shape index: {}]   ;;  %s3079_s12 = inlined_call_operand.vmem [shape: f32[1,8], index: 12, kind: input, shape index: {}]   ;;  %s3080_s13 = inlined_call_operand.<no memory space> [shape: f32[1,1], index: 13, kind: input, shape index: {}]   ;;  %s3081_s14 = inlined_call_operand.vmem [shape: bf16[16,16], index: 14, kind: input, shape index: {}]   ;;  %s3082_s15 = inlined_call_operand.vmem [shape: bf16[16,8], index: 15, kind: input, shape index: {}]   ;;  %s3083_s16 = inlined_call_operand.vmem [shape: bf16[16,8], index: 16, kind: input, shape index: {}]   ;;  %s3084_s17 = inlined_call_operand.vmem [shape: f32[16,1], index: 17, kind: input, shape index: {}]   ;;  %s3085_s18 = inlined_call_operand.hbm [shape: f32[2,16,256], index: 18, kind: output, shape index: {}]  }
   0x1   :  { %3114 = sst [smem:[#allocation13_spill]] %s3067_s0  ;;  %v23_v0 = vstv %s3080_s13 }
   0x2   :  { %3115 = sst [smem:[#allocation14_spill]] %s3068_s1  ;;  %24 = vst [vmem:[#allocation2] sm:$0x1] %v23_v0 }
   0x3   :  { %3116 = sst [smem:[#allocation15_spill]] %s3069_s2 }
   0x4   :  { %3117 = sst [smem:[#allocation16_spill]] %s3070_s3 }
   0x5   :  { %3118 = sst [smem:[#allocation17_spill]] %s3071_s4 }
   0x6   :  { %3119 = sst [smem:[#allocation18_spill]] %s3072_s5 }
   0x7   :  { %3120 = sst [smem:[#allocation19_spill]] %s3073_s6 }
   0x8   :  { %25 = vsyncpa [#allocation4], 0 }
   0x9   :  { %26 = vsyncpa [#allocation5], 0 }
   0xa   :  { %28 = vsyncpa [#allocation5 + $0x1], 0  ;;  %s2465_s29 = smov 0   ;;  %s2467_s30 = smov 0  }
   0xb   :  { %s2469_s0 = smov 0   ;;  %s2471_s19 = smov 0  }
   0xc LB: > { %3121 = sst [smem:[#allocation9_spill]] %s2345_s0  ;;  %s2486_s13 = sadd.s32 4294967295, %s2349_s19   ;;  %s2349_s19 = sphi %s2471_s19, %s3153_s19   ;;  %s2345_s0 = sphi %s2469_s0, %s3155_s0   ;;  %s2341_s30 = sphi %s2467_s30, %s3157_s30   ;;  %s2337_s29 = sphi %s2465_s29, %s3156_s29  }
   0xd   : > { %s2031_s1 = sadd.s32 4294967294, %s2349_s19   ;;  %s2490_s20 = sadd.s32 1, %s2349_s19  }
   0xe   : > { %3122 = sst [smem:[#allocation10_spill]] %s2490_s20  ;;  %s429_s21 = sadd.s32 1, %s2345_s0 }
   0xf   : > { %s426_s22 = ssub.s32 %s2349_s19, %s2490_s20  ;;  %p439_p0 = scmp.ne.s32.totalorder %s2345_s0, %s2341_s30 }
  0x10   : > { %p427_p1 = scmp.eq.s32.totalorder %s426_s22, 0  ;;  %p440_p2 = scmp.eq.s32.totalorder %s2486_s13, 1 }
  0x11   : > { %p445_p3 = scmp.ne.s32.totalorder %s2341_s30, %s2337_s29  ;;  %p446_p4 = scmp.eq.s32.totalorder %s2031_s1, 1 }
  0x12   : > { %s2501_s2 = scalar_select %p427_p1, %s2345_s0, %s429_s21  }
  0x13   : > { %p2503_p5 = por %p440_p2, %p439_p0  ;;  %p2507_p6 = por %p446_p4, %p445_p3 }
  0x14   : > { %3123 = sst [smem:[#allocation11_spill]] %s2501_s2  ;;  %p2032_p7 = scmp.ge.s32.totalorder %s2349_s19, 1 }
  0x15   : > { %s3124_s23 = scalar_select %p2503_p5, 1, 0 }
  0x16   : > { %s3125_s24 = scalar_select %p2507_p6, 1, 0 }
  0x17   : > { %p453_p8 = scmp.lt.s32.totalorder %s2349_s19, 3  ;;  %p3091_p9 = scmp.eq.s32.totalorder %s2486_s13, 0 }
  0x18   : > { %3126 = sst [smem:[#allocation12_spill]] %s3125_s24  ;;  %s2351_s26 = smov [#allocation3]  }
  0x19   : > { %p2514_p10 = pnand %p2032_p7, %p453_p8  ;;  %s475_s27 = sshll.u32 %s2351_s26, 4  ;;  %s476_s27 = int_to_ptr.vmem [resolvable:$true] %s475_s27 }
  0x1a   : > { %s3129_s5 = sld [smem:[#allocation18_spill]] }
  0x1b   : > { %s3127_s25 = scalar_select %p2514_p10, 1, 0 }
  0x1c   : > { %p2130_p11 = pneg %p2514_p10 }
  0x1e   : > { %p2522_p12 = pnand %p3091_p9, %p2130_p11 }
  0x20   : > { %s2255_s22 = scalar_lea.hbm %s3129_s5, 64  ;;  %p2257_p0 = pneg %p2522_p12 }
  0x21   : > { %p2256_p13 = scmp.ne.s32.totalorder %s3129_s5, %s2255_s22  ;;  %p2262_p3 = scmp.lt.u32.totalorder %s2255_s22, %s3129_s5 }
  0x23   : > { %p2258_p1 = pnand %p2257_p0, %p2256_p13 }
  0x25   : > { %p2259_p2 = pneg %p2258_p1 }
  0x27   : > { %p2264_p4 = pnand %p2262_p3, %p2259_p2 }
  0x29   : > { %2267 = shalt.err (!%p2264_p4)
}
  0x2a   : > { %s2268_s24 = scalar_lea.vmem %s476_s27, 64  ;;  %p2276_p9 = scmp.lt.s32.totalorder %s476_s27, %s476_s27 }
  0x2b   : > { %p2269_p7 = scmp.ne.s32.totalorder %s476_s27, %s2268_s24  ;;  %p2277_p6 = scmp.lt.s32.totalorder %s2268_s24, %s2268_s24 }
  0x2d   : > { %p2271_p8 = pnand %p2269_p7, %p2257_p0  ;;  %p2278_p5 = por %p2277_p6, %p2276_p9 }
  0x2f   : > { %p2272_p11 = pneg %p2271_p8 }
  0x31   : > { %p2279_p10 = pnand %p2278_p5, %p2272_p11 }
  0x33   : > { %2282 = shalt.err (!%p2279_p10)
}
  0x34   : > { %2133 = dma.hbm_to_vmem [thread:$0]  (!%p2522_p12), %s3129_s5, 64, %s476_s27, [#allocation4]  }
  0x35   : > { %p3130_p13 = scmp.ne.s32.totalorder %s3127_s25, 0 }
  0x36   : > { %p3131_p1 = scmp.eq.s32.totalorder (!%p3130_p13), %s2486_s13, 0 }
  0x37   : > { %539 = sbr.rel (%p3130_p13) target bundleno = 1784 (0x6f8), region = 92 }
  0x3e   : > { %2328 = dma.done.wait (%p3131_p1), [#allocation4], 64   ;;  %p3132_p0 = pmov %p3131_p1 }
  0x3f   : > { %p597_p6 = scmp.lt.s32.totalorder %s2486_s13, 1  ;;  %v2352_v1 = vmov 0   ;;  %s3133_s28 = sld [smem:[#allocation13_spill]]  ;;  %vm657_vm0 = vcmask 130048   ;;  %v2192_v43 = vld [vmem:[%s3081_s14] sm:$0xff]   ;;  %v799_v47 = vlaneseq  ;;  %vm899_vm3 = vcmask 1043456  }
  0x40   : > { %2330 = vsyncadd (%p3132_p0), [#allocation4], 4294967232  ;;  %693 = vmatprep.mubr.bf16.mxu0 %v2352_v1  ;;  %2188 = vset.pattern.permute.xlu0 %v2352_v1  ;;  %s3134_s3 = sld [smem:[#allocation16_spill]]  ;;  %s3135_s4 = sld [smem:[#allocation17_spill]]  ;;  %v2606_v44 = vld [vmem:[#allocation3] sm:$0xf] }
  0x41   : > { %s2552_s20 = scalar_select %p597_p6, %s2486_s13, 1  ;;  %784 = vmatprep.mubr.bf16.mxu1 %v2352_v1  ;;  %2189 = vset.pattern.permute.xlu1 %v2352_v1  ;;  %v2049_v45 = vcombine.low %v2606_v44, %v2606_v44  ;;  %v2623_v48 = vshrl.u32 %v799_v47, 7  ;;  %v2625_v49 = vand.u32 127, %v799_v47  ;;  %vm895_vm9 = vcmask 195584  }
  0x42   : > { %s3108_s27 = smov 1   ;;  %s3094_s26 = smov 113   ;;  %vm2364_vm11 = vmmov 0   ;;  %vm1466_vm12 = vcmask 261120   ;;  %vm1390_vm13 = vcmask 64512  }
  0x43   : > { %s2099_s24 = sshll.u32 %s2552_s20, 5  ;;  %s3102_s0 = smov 112   ;;  %v861_v50 = vsub.s32 3, %v2623_v48  ;;  %vm856_vm1 = vcmp.lt.s32.totalorder %v2625_v49, 1  ;;  %v878_v57 = vsub.s32 5, %v2623_v48  ;;  %vm873_vm2 = vcmp.lt.s32.totalorder %v2625_v49, 127 }
  0x44   : > { %s3100_s2 = smov 15   ;;  %s3112_s25 = smov 111   ;;  %vm801_vm4 = vcmp.lt.s32.totalorder %v2625_v49, 17  ;;  %vm818_vm5 = vcmp.lt.s32.totalorder %v2625_v49, 16  ;;  %vm1001_vm6 = vcmp.lt.s32.totalorder %v2625_v49, 113  ;;  %vm1018_vm7 = vcmp.lt.s32.totalorder %v2625_v49, 112 }
  0x45   : > { %s601_s1 = scalar_lea.vmem %s3133_s28, %s2099_s24  ;;  %s3106_s24 = smov 127   ;;  %vm835_vm8 = vcmp.lt.s32.totalorder %v2625_v49, 15  ;;  %vm1035_vm10 = vcmp.lt.s32.totalorder %v2625_v49, 111 }
  0x46   : > { %v632_v2 = vld [vmem:[%s601_s1 + $0x8] sm:$0xff]  ;;  %v634_v3 = vld [vmem:[%s601_s1 + $0x18] sm:$0xff]  ;;  %v631_v5 = vld [vmem:[%s601_s1] sm:$0xff]  ;;  %s3104_s28 = smov 17   ;;  %s3098_s21 = smov 104  }
  0x47   : > { %v641_v4 = vpack.c.bf16 %v634_v3, %v632_v2  ;;  %v633_v6 = vld [vmem:[%s601_s1 + $0x10] sm:$0xff]  ;;  %v2190_v8 = vld [vmem:[%s3134_s3] sm:$0xff]   ;;  %v610_v9 = vld [vmem:[%s3135_s4 + $0x8] sm:$0xff]  ;;  %s3096_s1 = smov 16   ;;  %s3136_s6 = sld [smem:[#allocation19_spill]] }
  0x48   : > { %v640_v7 = vpack.c.bf16 %v633_v6, %v631_v5  ;;  %649 = vperm.xlu0 %2188, %v610_v9   ;;  %v609_v10 = vld [vmem:[%s3135_s4] sm:$0xff]  ;;  %v2666_v9 = vsub.s32 0, %v2623_v48  ;;  %s3139_s22 = smov 17   ;;  %s3145_s3 = smov 80  }
  0x49   : > { %661 = vmatprep.subr.bf16.mxu0 %v641_v4  ;;  %s2040_s4 = sshll.u32 %s2552_s20, 3  ;;  %s3148_s20 = smov 127  }
  0x4a   : > { %662 = vmatpush1.bf16.msra.mxu0 %v640_v7  ;;  %s2100_s5 = sshll.u32 %s2486_s13, 9  ;;  %p3150_p9 = scmp.ne.s32.totalorder %s3124_s23, 0 }
  0x4c   : > { %644 = vperm.xlu0 %2188, %v609_v10  }
  0x4d   : > { %2042 = vmatmul.mubr.msk.bf16.vlgmr.msra.gmra.mrb[0].mxu0 %vm657_vm0, %v2190_v8  ;;  %v612_v46 = vld [vmem:[%s3136_s6] sm:$0xff] }
  0x4e   : > { %938 = vmatprep.mubr.bf16.mxu0 %v2352_v1 }
  0xc7   : > { %v650_v11 = vpop.permute.xlu0 %649 }
  0xcb   : > { %v645_v12 = vpop.permute.xlu0 %644 }
 0x120   : > { %v695_v13 = vpop.f32.mrb[0].mxu0 }
 0x121   : > { %v696_v14 = vadd.f32 %v695_v13, %v645_v12  ;;  %v697_v15 = vpop.f32.mrb[1].mxu0 }
 0x122   : > { %v698_v16 = vadd.f32 %v697_v15, %v645_v12  ;;  %v699_v17 = vpop.f32.mrb[2].mxu0  ;;  %v823_v12 = vsub.s32 1, %v2623_v48 }
 0x123   : > { %v2043_v18 = vmul.f32 -1.442695, %v696_v14  ;;  %v700_v19 = vadd.f32 %v699_v17, %v650_v11  ;;  %v701_v20 = vpop.f32.mrb[3].mxu0 }
 0x124   : > { %v2044_v21 = vmul.f32 -1.442695, %v698_v16  ;;  %v702_v22 = vadd.f32 %v701_v20, %v650_v11 }
 0x125   : > { %2199 = vpow2.f32 %v2043_v18  ;;  %v2045_v23 = vmul.f32 -1.442695, %v700_v19 }
 0x126   : > { %2201 = vpow2.f32 %v2044_v21  ;;  %v2046_v24 = vmul.f32 -1.442695, %v702_v22 }
 0x127   : > { %2203 = vpow2.f32 %v2045_v23 }
 0x128   : > { %2205 = vpow2.f32 %v2046_v24 }
 0x12f   : > { %v2200_v25 = vpop.eup %2199 }
 0x130   : > { %v2202_v26 = vpop.eup %2201  ;;  %v716_v27 = vadd.f32 1.0, %v2200_v25 }
 0x131   : > { %v2204_v28 = vpop.eup %2203  ;;  %v717_v29 = vadd.f32 1.0, %v2202_v26 }
 0x132   : > { %v2206_v30 = vpop.eup %2205  ;;  %2207 = vrcp.f32 %v716_v27  ;;  %v718_v31 = vadd.f32 1.0, %v2204_v28  ;;  %v1006_v28 = vsub.s32 6, %v2623_v48 }
 0x133   : > { %2209 = vrcp.f32 %v717_v29  ;;  %v719_v32 = vadd.f32 1.0, %v2206_v30  ;;  %v1023_v29 = vsub.s32 7, %v2623_v48 }
 0x134   : > { %2211 = vrcp.f32 %v718_v31 }
 0x135   : > { %2213 = vrcp.f32 %v719_v32 }
 0x13c   : > { %v2208_v33 = vpop.eup %2207 }
 0x13d   : > { %v2210_v34 = vpop.eup %2209  ;;  %v728_v40 = vmul.f32 %v2208_v33, %v696_v14 }
 0x13e   : > { %v2212_v35 = vpop.eup %2211  ;;  %v729_v39 = vmul.f32 %v2210_v34, %v698_v16 }
 0x13f   : > { %v2214_v36 = vpop.eup %2213  ;;  %v2571_v37 = vmul.f32 %v2212_v35, %v700_v19 }
 0x140   : > { %v2573_v38 = vmul.f32 %v2214_v36, %v702_v22 }
 0x141   : > { %869 = vrot.lane.b32.xlu0 %v2571_v37, %s3106_s24  ;;  %852 = vrot.lane.b32.xlu1 %v2571_v37, %s3108_s27  ;;  %v732_v42 = vpack.c.bf16 %v2571_v37, %v728_v40 }
 0x142   : > { %v733_v41 = vpack.c.bf16 %v2573_v38, %v729_v39 }
 0x144   : > { %752 = vmatprep.subr.bf16.mxu1 %v733_v41 }
 0x145   : > { %795 = vrot.lane.b32.xlu0 %v2571_v37, %s3104_s28  ;;  %854 = vrot.lane.b32.xlu1 %v2573_v38, %s3108_s27 }
 0x146   : > { %753 = vmatpush1.bf16.msra.mxu1 %v732_v42 }
 0x149   : > { %814 = vrot.lane.b32.xlu0 %v2571_v37, %s3096_s1  ;;  %871 = vrot.lane.b32.xlu1 %v2573_v38, %s3106_s24 }
 0x14a   : > { %2048 = vmatmul.mubr.msk.bf16.vlgmr.msra.gmra.mrb[0].mxu1 %vm657_vm0, %v2192_v43 }
 0x14b   : > { %988 = vmatprep.mubr.bf16.mxu1 %v2352_v1 }
 0x14d   : > { %997 = vrot.lane.b32.xlu0 %v2571_v37, %s3094_s26  ;;  %797 = vrot.lane.b32.xlu1 %v2573_v38, %s3104_s28 }
 0x151   : > { %1014 = vrot.lane.b32.xlu0 %v2571_v37, %s3102_s0  ;;  %816 = vrot.lane.b32.xlu1 %v2573_v38, %s3096_s1  ;;  %s3110_s1 = smov 80  }
 0x155   : > { %831 = vrot.lane.b32.xlu0 %v2571_v37, %s3100_s2  ;;  %999 = vrot.lane.b32.xlu1 %v2573_v38, %s3094_s26  ;;  %s3143_s26 = smov 15  }
 0x159   : > { %1031 = vrot.lane.b32.xlu0 %v2571_v37, %s3112_s25  ;;  %1016 = vrot.lane.b32.xlu1 %v2573_v38, %s3102_s0  ;;  %s3137_s0 = sld [smem:[#allocation15_spill]] }
 0x15d   : > { %893 = vrot.lane.b32.xlu0 %v2049_v45, %s3098_s21  ;;  %833 = vrot.lane.b32.xlu1 %v2573_v38, %s3100_s2  ;;  %s3141_s2 = smov 113   ;;  %s3142_s21 = smov 112  }
 0x15f   : > { %s3138_s28 = smov %s3137_s0  ;;  %v2631_v51 = vld [vmem:[%s3137_s0] sm:$0xff]  ;;  %s3140_s0 = smov 16  }
 0x160   : > { %v2636_v52 = vld [vmem:[%s3138_s28 + $0x8] sm:$0xff]  ;;  %v2640_v55 = vrot.slane %v2631_v51, %v861_v50  ;;  %v2654_v0 = vrot.slane %v2631_v51, %v878_v57  ;;  %v2674_v17 = vrot.slane %v2631_v51, %v2666_v9  ;;  %v2684_v20 = vrot.slane %v2631_v51, %v823_v12 }
 0x161   : > { %1108 = vperm.xlu0 %2188, %v612_v46   ;;  %1033 = vrot.lane.b32.xlu1 %v2573_v38, %s3112_s25  ;;  %v2643_v56 = vrot.slane %v2636_v52, %v861_v50  ;;  %v2657_v2 = vrot.slane %v2636_v52, %v878_v57  ;;  %v2678_v18 = vrot.slane %v2636_v52, %v2666_v9 }
 0x162   : > { %v2687_v21 = vrot.slane %v2636_v52, %v823_v12  ;;  %v2706_v39 = vrot.slane %v2631_v51, %v1006_v28  ;;  %v2709_v40 = vrot.slane %v2636_v52, %v1006_v28  ;;  %v2713_v41 = vrot.slane %v2631_v51, %v1023_v29 }
 0x163   : > { %v2716_v42 = vrot.slane %v2636_v52, %v1023_v29 }
 0x165   : > { %1052 = vrot.lane.b32.xlu1 %v2049_v45, %s3110_s1  ;;  %s3144_s1 = smov 104  }
 0x1b3   : > { %v870_v53 = vpop.permute.xlu0 %869  ;;  %v853_v54 = vpop.permute.xlu1 %852 }
 0x1b7   : > { %v796_v58 = vpop.permute.xlu0 %795  ;;  %v855_v59 = vpop.permute.xlu1 %854 }
 0x1b8   : > { %v857_v60 = vsel %vm856_vm1, %v853_v54, %v855_v59  ;;  %v858_v61 = vsel %vm856_vm1, %v855_v59, %v853_v54 }
 0x1b9   : > { %v867_v62 = vmul.f32 %v2640_v55, %v858_v61  ;;  %v868_v63 = vmul.f32 %v2643_v56, %v857_v60 }
 0x1bb   : > { %v886_v3 = vpack.c.bf16 %v2571_v37, %v867_v62  ;;  %v815_v4 = vpop.permute.xlu0 %814  ;;  %v872_v5 = vpop.permute.xlu1 %871  ;;  %v887_v6 = vpack.c.bf16 %v2573_v38, %v868_v63  ;;  %v840_v38 = vsub.s32 2, %v2623_v48 }
 0x1bc   : > { %v874_v7 = vsel %vm873_vm2, %v870_v53, %v872_v5  ;;  %v875_v8 = vsel %vm873_vm2, %v872_v5, %v870_v53 }
 0x1bd   : > { %v884_v10 = vmul.f32 %v2654_v0, %v874_v7  ;;  %v885_v11 = vmul.f32 %v2657_v2, %v875_v8  ;;  %906 = vmatprep.subr.bf16.mxu0 %v887_v6  ;;  %v2724_v48 = vrot.slane %v2631_v51, %v840_v38  ;;  %v2731_v54 = vrot.slane %v2636_v52, %v840_v38  ;;  %v2749_v6 = vld [vmem:[%s3138_s28 + $0x10] ss:$0 sm:$0xff]  ;;  %v2754_v7 = vld [vmem:[%s3138_s28 + $0x18] ss:$0 sm:$0xff] }
 0x1be   : > { %907 = vmatpush1.bf16.msra.mxu0 %v886_v3 }
 0x1bf   : > { %v888_v13 = vpack.c.bf16 %v884_v10, %v884_v10  ;;  %v889_v14 = vpack.c.bf16 %v885_v11, %v885_v11  ;;  %v998_v15 = vpop.permute.xlu0 %997  ;;  %v798_v16 = vpop.permute.xlu1 %797 }
 0x1c0   : > { %v802_v22 = vsel %vm801_vm4, %v796_v58, %v798_v16  ;;  %v803_v23 = vsel %vm801_vm4, %v798_v16, %v796_v58 }
 0x1c1   : > { %2050 = vmatprep.subr.msk.bf16.mxu0 %vm899_vm3, %v889_v14  ;;  %v901_v19 = vsel %vm899_vm3, %v888_v13, 0  ;;  %v812_v30 = vmul.f32 %v2674_v17, %v803_v23  ;;  %v813_v31 = vmul.f32 %v2678_v18, %v802_v22 }
 0x1c2   : > { %909 = vmatpush1.bf16.msra.mxu0 %v901_v19 }
 0x1c3   : > { %v1015_v24 = vpop.permute.xlu0 %1014  ;;  %v817_v25 = vpop.permute.xlu1 %816 }
 0x1c4   : > { %v819_v26 = vsel %vm818_vm5, %v815_v4, %v817_v25  ;;  %v820_v27 = vsel %vm818_vm5, %v817_v25, %v815_v4 }
 0x1c5   : > { %v829_v32 = vmul.f32 %v2684_v20, %v820_v27  ;;  %v830_v33 = vmul.f32 %v2687_v21, %v819_v26 }
 0x1c7   : > { %v848_v34 = vpack.c.bf16 %v829_v32, %v812_v30  ;;  %v832_v35 = vpop.permute.xlu0 %831  ;;  %v1000_v36 = vpop.permute.xlu1 %999  ;;  %v849_v37 = vpack.c.bf16 %v830_v33, %v813_v31 }
 0x1c8   : > { %v1002_v43 = vsel %vm1001_vm6, %v998_v15, %v1000_v36  ;;  %v1003_v45 = vsel %vm1001_vm6, %v1000_v36, %v998_v15 }
 0x1c9   : > { %956 = vmatprep.subr.bf16.mxu1 %v849_v37  ;;  %v1012_v57 = vmul.f32 %v2706_v39, %v1002_v43  ;;  %v1013_v58 = vmul.f32 %v2709_v40, %v1003_v45 }
 0x1ca   : > { %957 = vmatpush1.bf16.msra.mxu1 %v848_v34 }
 0x1cb   : > { %v1032_v46 = vpop.permute.xlu0 %1031  ;;  %v1017_v47 = vpop.permute.xlu1 %1016 }
 0x1cc   : > { %v1019_v50 = vsel %vm1018_vm7, %v1015_v24, %v1017_v47  ;;  %v1020_v53 = vsel %vm1018_vm7, %v1017_v47, %v1015_v24 }
 0x1cd   : > { %v1029_v59 = vmul.f32 %v2713_v41, %v1019_v50  ;;  %v1030_v60 = vmul.f32 %v2716_v42, %v1020_v53 }
 0x1cf   : > { %v1048_v51 = vpack.c.bf16 %v1029_v59, %v1012_v57  ;;  %v834_v61 = vpop.permute.xlu1 %833  ;;  %v894_v62 = vpop.permute.xlu0 %893  ;;  %v1049_v63 = vpack.c.bf16 %v1030_v60, %v1013_v58 }
 0x1d0   : > { %v836_v3 = vsel %vm835_vm8, %v832_v35, %v834_v61  ;;  %v837_v52 = vsel %vm835_vm8, %v834_v61, %v832_v35  ;;  %2051 = vmatmul.mubr.msk.bf16.vlgmr.msra.gmra.mrb[4].mxu0 %vm895_vm9, %v894_v62 }
 0x1d1   : > { %v846_v4 = vmul.f32 %v2724_v48, %v837_v52  ;;  %v847_v5 = vmul.f32 %v2731_v54, %v836_v3  ;;  %1063 = vmatprep.subr.bf16.mxu0 %v1049_v63  ;;  %1095 = vmatprep.mubr.bf16.mxu0 %v2352_v1  ;;  %v2788_v3 = vld [vmem:[%s3074_s7] sm:$0xf] }
 0x1d2   : > { %1064 = vmatpush1.bf16.msra.mxu0 %v1048_v51  ;;  %v2060_v52 = vcombine.low %v2788_v3, %v2788_v3 }
 0x1d3   : > { %v850_v8 = vpack.c.bf16 %v846_v4, %v846_v4  ;;  %v851_v10 = vpack.c.bf16 %v847_v5, %v847_v5  ;;  %v1034_v11 = vpop.permute.xlu1 %1033  ;;  %v614_v4 = vld [vmem:[%s3075_s8] sm:$0xff] }
 0x1d4   : > { %v1036_v12 = vsel %vm1035_vm10, %v1032_v46, %v1034_v11  ;;  %v1037_v13 = vsel %vm1035_vm10, %v1034_v11, %v1032_v46 }
 0x1d5   : > { %v1046_v14 = vmul.f32 %v2749_v6, %v1036_v12  ;;  %v1047_v15 = vmul.f32 %v2754_v7, %v1037_v13  ;;  %2052 = vmatprep.subr.msk.bf16.mxu1 %vm899_vm3, %v851_v10  ;;  %v951_v16 = vsel %vm899_vm3, %v850_v8, 0 }
 0x1d6   : > { %959 = vmatpush1.bf16.msra.mxu1 %v951_v16 }
 0x1d7   : > { %v1050_v19 = vpack.c.bf16 %v1046_v14, %v1046_v14  ;;  %v1051_v22 = vpack.c.bf16 %v1047_v15, %v1047_v15  ;;  %v1053_v24 = vpop.permute.xlu1 %1052 }
 0x1d9   : > { %2053 = vmatmul.mubr.msk.bf16.vlgmr.msra.gmra.mrb[4].mxu1 %vm895_vm9, %v2606_v44  ;;  %2056 = vmatprep.subr.msk.bf16.mxu0 %vm899_vm3, %v1051_v22  ;;  %v1058_v23 = vsel %vm899_vm3, %v1050_v19, 0 }
 0x1da   : > { %1066 = vmatpush1.bf16.msra.mxu0 %v1058_v23  ;;  %1221 = vmatprep.mubr.bf16.mxu1 %v2352_v1 }
 0x1dd   : > { %2057 = vmatmul.mubr.msk.bf16.vlgmr.msra.gmra.mrb[8].mxu0 %vm895_vm9, %v1053_v24 }
 0x1de   : > { %1271 = vmatprep.mubr.bf16.mxu0 %v2352_v1 }
 0x1e0   : > { %v1109_v37 = vpop.permute.xlu0 %1108 }
 0x2a3   : > { %v940_v25 = vpop.f32.mrb[4].mxu0 }
 0x2a4   : > { %v942_v26 = vpop.f32.mrb[5].mxu0 }
 0x2a5   : > { %v944_v27 = vpop.f32.mrb[6].mxu0 }
 0x2a6   : > { %v945_v28 = vpop.f32.mrb[7].mxu0 }
 0x2ac   : > { %v990_v29 = vpop.f32.mrb[4].mxu1 }
 0x2ad   : > { %v991_v30 = vadd.f32 %v990_v29, %v940_v25  ;;  %v992_v31 = vpop.f32.mrb[5].mxu1 }
 0x2ae   : > { %v993_v44 = vadd.f32 %v992_v31, %v942_v26  ;;  %v994_v32 = vpop.f32.mrb[6].mxu1 }
 0x2af   : > { %v995_v33 = vpop.f32.mrb[7].mxu1 }
 0x2b0   : > { %v1097_v34 = vpop.f32.mrb[8].mxu0 }
 0x2b1   : > { %v1104_v35 = vadd.f32 %v1097_v34, %v991_v30  ;;  %v1099_v36 = vpop.f32.mrb[9].mxu0 }
 0x2b2   : > { %v1105_v38 = vadd.f32 %v1099_v36, %v993_v44  ;;  %v1101_v43 = vpop.f32.mrb[10].mxu0 }
 0x2b3   : > { %v1111_v45 = vadd.f32 %v1109_v37, %v1104_v35  ;;  %v1102_v46 = vpop.f32.mrb[11].mxu0 }
 0x2b4   : > { %v1112_v47 = vadd.f32 %v1109_v37, %v1105_v38 }
 0x2b5   : > { %v2058_v50 = vmul.f32 -1.442695, %v1111_v45 }
 0x2b6   : > { %v2059_v53 = vmul.f32 -1.442695, %v1112_v47 }
 0x2b7   : > { %2215 = vpow2.f32 %v2058_v50 }
 0x2b8   : > { %2217 = vpow2.f32 %v2059_v53 }
 0x2c1   : > { %v2216_v57 = vpop.eup %2215 }
 0x2c2   : > { %v2218_v58 = vpop.eup %2217  ;;  %v1119_v59 = vadd.f32 1.0, %v2216_v57 }
 0x2c3   : > { %v1120_v60 = vadd.f32 1.0, %v2218_v58 }
 0x2c4   : > { %2219 = vrcp.f32 %v1119_v59 }
 0x2c5   : > { %2221 = vrcp.f32 %v1120_v60 }
 0x2ce   : > { %v2220_v51 = vpop.eup %2219 }
 0x2cf   : > { %v2222_v61 = vpop.eup %2221  ;;  %v1125_v62 = vmul.f32 %v2220_v51, %v1111_v45 }
 0x2d0   : > { %v1126_v63 = vmul.f32 %v2222_v61, %v1112_v47 }
 0x2d1   : > { %1155 = vrot.lane.b32.xlu1 %v1125_v62, %s3108_s27 }
 0x2d2   : > { %1157 = vrot.lane.b32.xlu0 %v1126_v63, %s3108_s27  ;;  %s3149_s27 = smov 111  }
 0x2d5   : > { %1163 = vrot.lane.b32.xlu1 %v1125_v62, %s3106_s24 }
 0x2d6   : > { %1165 = vrot.lane.b32.xlu0 %v1126_v63, %s3106_s24 }
 0x2d9   : > { %1127 = vrot.lane.b32.xlu1 %v1125_v62, %s3139_s22 }
 0x2da   : > { %1129 = vrot.lane.b32.xlu0 %v1126_v63, %s3139_s22 }
 0x2dd   : > { %1135 = vrot.lane.b32.xlu1 %v1125_v62, %s3140_s0 }
 0x2de   : > { %1137 = vrot.lane.b32.xlu0 %v1126_v63, %s3140_s0 }
 0x2e1   : > { %1280 = vrot.lane.b32.xlu1 %v1125_v62, %s3141_s2 }
 0x2e2   : > { %1282 = vrot.lane.b32.xlu0 %v1126_v63, %s3141_s2 }
 0x2e5   : > { %1288 = vrot.lane.b32.xlu1 %v1125_v62, %s3142_s21 }
 0x2e6   : > { %1290 = vrot.lane.b32.xlu0 %v1126_v63, %s3142_s21 }
 0x2e9   : > { %1143 = vrot.lane.b32.xlu1 %v1125_v62, %s3143_s26 }
 0x2ea   : > { %1145 = vrot.lane.b32.xlu0 %v1126_v63, %s3143_s26 }
 0x2ed   : > { %1296 = vrot.lane.b32.xlu1 %v1125_v62, %s3112_s25 }
 0x2ee   : > { %1298 = vrot.lane.b32.xlu0 %v1126_v63, %s3112_s25  ;;  %s3146_s25 = sld [smem:[#allocation14_spill]] }
 0x2f1   : > { %1178 = vrot.lane.b32.xlu1 %v2060_v52, %s3144_s1 }
 0x2f2   : > { %1308 = vrot.lane.b32.xlu0 %v2060_v52, %s3145_s3 }
 0x2f4   : > { %s605_s6 = scalar_lea.vmem %s3146_s25, %s2040_s4 }
 0x2f5   : > { %1364 = vperm.xlu1 %2189, %v614_v4  }
 0x343   : > { %v1156_v5 = vpop.permute.xlu1 %1155 }
 0x344   : > { %v1158_v8 = vpop.permute.xlu0 %1157 }
 0x345   : > { %v1159_v10 = vsel %vm856_vm1, %v1156_v5, %v1158_v8  ;;  %v1160_v11 = vsel %vm856_vm1, %v1158_v8, %v1156_v5 }
 0x346   : > { %v1161_v12 = vmul.f32 %v1160_v11, %v2640_v55  ;;  %v1162_v13 = vmul.f32 %v1159_v10, %v2643_v56 }
 0x347   : > { %v1164_v14 = vpop.permute.xlu1 %1163 }
 0x348   : > { %v1171_v15 = vpack.c.bf16 %v1125_v62, %v1161_v12  ;;  %v1166_v16 = vpop.permute.xlu0 %1165  ;;  %v1172_v19 = vpack.c.bf16 %v1126_v63, %v1162_v13 }
 0x349   : > { %v1167_v22 = vsel %vm873_vm2, %v1164_v14, %v1166_v16  ;;  %v1168_v23 = vsel %vm873_vm2, %v1166_v16, %v1164_v14 }
 0x34a   : > { %v1169_v24 = vmul.f32 %v1167_v22, %v2654_v0  ;;  %v1170_v25 = vmul.f32 %v1168_v23, %v2657_v2  ;;  %1189 = vmatprep.subr.bf16.mxu1 %v1172_v19 }
 0x34b   : > { %1190 = vmatpush1.bf16.msra.mxu1 %v1171_v15  ;;  %v1128_v26 = vpop.permute.xlu1 %1127 }
 0x34c   : > { %v1173_v27 = vpack.c.bf16 %v1169_v24, %v1169_v24  ;;  %v1174_v28 = vpack.c.bf16 %v1170_v25, %v1170_v25  ;;  %v1130_v29 = vpop.permute.xlu0 %1129 }
 0x34d   : > { %v1131_v31 = vsel %vm801_vm4, %v1128_v26, %v1130_v29  ;;  %v1132_v44 = vsel %vm801_vm4, %v1130_v29, %v1128_v26  ;;  %v2194_v29 = vld [vmem:[%s3078_s11] sm:$0xff]  }
 0x34e   : > { %2061 = vmatprep.subr.msk.bf16.mxu1 %vm899_vm3, %v1174_v28  ;;  %v1184_v30 = vsel %vm899_vm3, %v1173_v27, 0  ;;  %v1133_v36 = vmul.f32 %v1132_v44, %v2674_v17  ;;  %v1134_v37 = vmul.f32 %v1131_v31, %v2678_v18  ;;  %v2363_v44 = vmov 0.0  }
 0x34f   : > { %1192 = vmatpush1.bf16.msra.mxu1 %v1184_v30  ;;  %v1136_v32 = vpop.permute.xlu1 %1135 }
 0x350   : > { %v1138_v33 = vpop.permute.xlu0 %1137 }
 0x351   : > { %v1139_v34 = vsel %vm818_vm5, %v1136_v32, %v1138_v33  ;;  %v1140_v35 = vsel %vm818_vm5, %v1138_v33, %v1136_v32  ;;  %v635_v33 = vld [vmem:[%s605_s6] sm:$0xff]  ;;  %s3023_s6 = scalar_lea.hbm %s3085_s18, %s2100_s5 }
 0x352   : > { %v1141_v38 = vmul.f32 %v1140_v35, %v2684_v20  ;;  %v1142_v43 = vmul.f32 %v1139_v34, %v2687_v21  ;;  %v2195_v34 = vld [vmem:[%s3078_s11 + $0x8] sm:$0xff]  }
 0x353   : > { %v1281_v45 = vpop.permute.xlu1 %1280 }
 0x354   : > { %v1151_v46 = vpack.c.bf16 %v1141_v38, %v1133_v36  ;;  %v1283_v47 = vpop.permute.xlu0 %1282  ;;  %v1152_v50 = vpack.c.bf16 %v1142_v43, %v1134_v37  ;;  %v1447_v36 = vpack.c.bf16 %v635_v33, %v635_v33  ;;  %v629_v33 = vld [vmem:[%s3084_s17] sm:$0xff] }
 0x355   : > { %v1285_v53 = vsel %vm1001_vm6, %v1283_v47, %v1281_v45  ;;  %v1284_v8 = vsel %vm1001_vm6, %v1281_v45, %v1283_v47 }
 0x356   : > { %1239 = vmatprep.subr.bf16.mxu0 %v1152_v50  ;;  %v1287_v60 = vmul.f32 %v1285_v53, %v2709_v40  ;;  %v1286_v19 = vmul.f32 %v1284_v8, %v2706_v39 }
 0x357   : > { %1240 = vmatpush1.bf16.msra.mxu0 %v1151_v46  ;;  %v1289_v57 = vpop.permute.xlu1 %1288 }
 0x358   : > { %v1291_v58 = vpop.permute.xlu0 %1290 }
 0x359   : > { %v1293_v59 = vsel %vm1018_vm7, %v1291_v58, %v1289_v57  ;;  %v1292_v62 = vsel %vm1018_vm7, %v1289_v57, %v1291_v58 }
 0x35a   : > { %v1295_v51 = vmul.f32 %v1293_v59, %v2716_v42  ;;  %v1294_v12 = vmul.f32 %v1292_v62, %v2713_v41 }
 0x35b   : > { %v1144_v61 = vpop.permute.xlu1 %1143 }
 0x35c   : > { %v1146_v63 = vpop.permute.xlu0 %1145  ;;  %v1305_v52 = vpack.c.bf16 %v1295_v51, %v1287_v60  ;;  %v1304_v27 = vpack.c.bf16 %v1294_v12, %v1286_v19 }
 0x35d   : > { %v1147_v4 = vsel %vm835_vm8, %v1144_v61, %v1146_v63  ;;  %v1148_v5 = vsel %vm835_vm8, %v1146_v63, %v1144_v61 }
 0x35e   : > { %v1149_v10 = vmul.f32 %v1148_v5, %v2724_v48  ;;  %v1150_v11 = vmul.f32 %v1147_v4, %v2731_v54  ;;  %1319 = vmatprep.subr.bf16.mxu1 %v1305_v52 }
 0x35f   : > { %v1297_v13 = vpop.permute.xlu1 %1296 }
 0x360   : > { %v1153_v14 = vpack.c.bf16 %v1149_v10, %v1149_v10  ;;  %v1154_v15 = vpack.c.bf16 %v1150_v11, %v1150_v11  ;;  %v1299_v16 = vpop.permute.xlu0 %1298 }
 0x361   : > { %v1300_v22 = vsel %vm1035_vm10, %v1297_v13, %v1299_v16  ;;  %v1301_v23 = vsel %vm1035_vm10, %v1299_v16, %v1297_v13 }
 0x362   : > { %v1302_v24 = vmul.f32 %v2749_v6, %v1300_v22  ;;  %v1303_v25 = vmul.f32 %v2754_v7, %v1301_v23  ;;  %2063 = vmatprep.subr.msk.bf16.mxu0 %vm899_vm3, %v1154_v15  ;;  %v1234_v26 = vsel %vm899_vm3, %v1153_v14, 0 }
 0x363   : > { %1242 = vmatpush1.bf16.msra.mxu0 %v1234_v26  ;;  %v1179_v28 = vpop.permute.xlu1 %1178 }
 0x364   : > { %v1306_v30 = vpack.c.bf16 %v1302_v24, %v1302_v24  ;;  %v1307_v31 = vpack.c.bf16 %v1303_v25, %v1303_v25  ;;  %2062 = vmatmul.mubr.msk.bf16.vlgmr.msra.gmra.mrb[8].mxu1 %vm895_vm9, %v1179_v28  ;;  %2104 = vmatprep.subr.bf16.mxu0 %v2363_v44  ;;  %v1309_v35 = vpop.permute.xlu0 %1308  ;;  %v2197_v25 = vld [vmem:[%s3082_s15] sm:$0xff]  }
 0x365   : > { %1320 = vmatpush1.bf16.msra.mxu1 %v1304_v27  ;;  %1351 = vmatprep.mubr.bf16.mxu1 %v2352_v1 }
 0x366   : > { %2064 = vmatmul.mubr.msk.bf16.vlgmr.msra.gmra.mrb[12].mxu0 %vm895_vm9, %v2788_v3  ;;  %2065 = vmatprep.subr.msk.bf16.mxu1 %vm899_vm3, %v1307_v31  ;;  %v1314_v32 = vsel %vm899_vm3, %v1306_v30, 0  ;;  %v615_v30 = vld [vmem:[%s3076_s9] sm:$0xf] }
 0x367   : > { %2105 = vmatpush3.bf16.msra.mxu0 %v2194_v29  ;;  %2108 = vmatprep.mubr.msk.bf16.mxu0 %vm2364_vm11, %v2363_v44  ;;  %v2076_v31 = vcombine.low %v615_v30, %v615_v30 }
 0x368   : > { %2106 = vmatprep.subr.bf16.mxu0 %v2363_v44  ;;  %v622_v44 = vld [vmem:[#allocation2] sm:$0x1] }
 0x369   : > { %1322 = vmatpush1.bf16.msra.mxu1 %v1314_v32  ;;  %v616_v32 = vld [vmem:[%s3077_s10] sm:$0xff] }
 0x36b   : > { %2107 = vmatpush3.bf16.msra.mxu0 %v2195_v34  ;;  %v630_v34 = vld [vmem:[%s3084_s17 + $0x8] sm:$0xff] }
 0x36c   : > { %2066 = vmatmul.mubr.msk.bf16.vlgmr.msra.gmra.mrb[12].mxu1 %vm895_vm9, %v1309_v35 }
 0x36d   : > { %1432 = vmatprep.mubr.bf16.mxu1 %v2352_v1 }
 0x36e   : > { %2109 = vmatmul.mubr.msk.bf16.vlgmr.msra.gmra.mrb[16].mxu0 %vm1466_vm12, %v1447_v36 }
 0x36f   : > { %1604 = vmatprep.mubr.bf16.mxu0 %v2352_v1 }
 0x374   : > { %v1365_v59 = vpop.permute.xlu1 %1364 }
 0x437   : > { %v1223_v3 = vpop.f32.mrb[8].mxu1 }
 0x438   : > { %v1225_v37 = vpop.f32.mrb[9].mxu1 }
 0x439   : > { %v1227_v38 = vpop.f32.mrb[10].mxu1  ;;  %v1273_v43 = vpop.f32.mrb[12].mxu0 }
 0x43a   : > { %v1274_v45 = vadd.f32 %v1273_v43, %v1223_v3  ;;  %v1228_v46 = vpop.f32.mrb[11].mxu1  ;;  %v1275_v47 = vpop.f32.mrb[13].mxu0 }
 0x43b   : > { %v1276_v50 = vadd.f32 %v1275_v47, %v1225_v37  ;;  %v1277_v53 = vpop.f32.mrb[14].mxu0 }
 0x43c   : > { %v1278_v57 = vpop.f32.mrb[15].mxu0 }
 0x43f   : > { %v1353_v58 = vpop.f32.mrb[12].mxu1 }
 0x440   : > { %v1360_v60 = vadd.f32 %v1353_v58, %v1274_v45  ;;  %v1355_v51 = vpop.f32.mrb[13].mxu1 }
 0x441   : > { %v1361_v61 = vadd.f32 %v1355_v51, %v1276_v50  ;;  %v1357_v62 = vpop.f32.mrb[14].mxu1  ;;  %v2897_v26 = vpop.f32.mrb[16].mxu0 }
 0x442   : > { %v1367_v63 = vadd.f32 %v1365_v59, %v1360_v60  ;;  %v1358_v52 = vpop.f32.mrb[15].mxu1  ;;  %v2110_v27 = vpop.f32.mrb[17].mxu0 }
 0x443   : > { %v1368_v4 = vadd.f32 %v1365_v59, %v1361_v61  ;;  %v1507_v28 = vpop.f32.mrb[18].mxu0 }
 0x444   : > { %v2067_v5 = vmul.f32 -1.442695, %v1367_v63  ;;  %v2111_v29 = vpop.f32.mrb[19].mxu0 }
 0x445   : > { %v2068_v8 = vmul.f32 -1.442695, %v1368_v4 }
 0x446   : > { %2223 = vpow2.f32 %v2067_v5 }
 0x447   : > { %2225 = vpow2.f32 %v2068_v8 }
 0x450   : > { %v2224_v10 = vpop.eup %2223 }
 0x451   : > { %v2226_v11 = vpop.eup %2225  ;;  %v1375_v12 = vadd.f32 1.0, %v2224_v10 }
 0x452   : > { %v1376_v13 = vadd.f32 1.0, %v2226_v11  ;;  %v2072_v11 = vld [vmem:[%s3079_s12] ss:$0 sm:$0xff] }
 0x453   : > { %2227 = vrcp.f32 %v1375_v12 }
 0x454   : > { %2229 = vrcp.f32 %v1376_v13 }
 0x45d   : > { %v2228_v14 = vpop.eup %2227 }
 0x45e   : > { %v2230_v15 = vpop.eup %2229  ;;  %v2870_v16 = vmul.f32 %v2228_v14, %v1367_v63 }
 0x45f   : > { %v2872_v19 = vmul.f32 %v2230_v15, %v1368_v4 }
 0x460   : > { %1510 = vrot.lane.b32.xlu0 %v2870_v16, %s3139_s22  ;;  %v1383_v22 = vpack.c.bf16 %v2870_v16, %v2870_v16 }
 0x461   : > { %1512 = vrot.lane.b32.xlu1 %v2872_v19, %s3139_s22  ;;  %v2882_v23 = vpack.c.bf16 %v2872_v19, %v2872_v19  ;;  %s3147_s22 = smov 1  }
 0x462   : > { %v2885_v24 = vsel %vm899_vm3, %v1383_v22, 0 }
 0x463   : > { %2070 = vmatprep.subr.msk.bf16.mxu1 %vm899_vm3, %v2882_v23 }
 0x464   : > { %1518 = vrot.lane.b32.xlu0 %v2870_v16, %s3140_s0  ;;  %1401 = vmatpush1.bf16.msra.mxu1 %v2885_v24 }
 0x465   : > { %1520 = vrot.lane.b32.xlu1 %v2872_v19, %s3140_s0 }
 0x467   : > { %2071 = vmatmul.mubr.msk.bf16.vlgmr.msra.gmra.mrb[0].mxu1 %vm1390_vm13, %v2197_v25  ;;  %v1505_v25 = vadd.f32 %v2072_v11, %v2897_v26 }
 0x468   : > { %1526 = vrot.lane.b32.xlu0 %v2870_v16, %s3143_s26  ;;  %1654 = vmatprep.mubr.bf16.mxu1 %v2352_v1 }
 0x469   : > { %1528 = vrot.lane.b32.xlu1 %v2872_v19, %s3143_s26  ;;  %v1752_v28 = vpack.c.bf16 %v1505_v25, %v1505_v25  ;;  %s594_s26 = sand.u32 1, %s2341_s30  }
 0x46a   : > { %s2037_s24 = sshll.u32 %s594_s26, 5  ;;  %s3025_s13 = scalar_lea.sflag [#allocation5], %s594_s26 }
 0x46c   : > { %1538 = vrot.lane.b32.xlu0 %v2870_v16, %s3147_s22 }
 0x46d   : > { %1540 = vrot.lane.b32.xlu1 %v2872_v19, %s3147_s22 }
 0x470   : > { %1546 = vrot.lane.b32.xlu0 %v2870_v16, %s3148_s20 }
 0x471   : > { %1548 = vrot.lane.b32.xlu1 %v2872_v19, %s3148_s20 }
 0x474   : > { %1663 = vrot.lane.b32.xlu0 %v2870_v16, %s3141_s2 }
 0x475   : > { %1665 = vrot.lane.b32.xlu1 %v2872_v19, %s3141_s2 }
 0x478   : > { %1671 = vrot.lane.b32.xlu0 %v2870_v16, %s3142_s21 }
 0x479   : > { %1673 = vrot.lane.b32.xlu1 %v2872_v19, %s3142_s21 }
 0x47c   : > { %1679 = vrot.lane.b32.xlu0 %v2870_v16, %s3149_s27 }
 0x47d   : > { %1681 = vrot.lane.b32.xlu1 %v2872_v19, %s3149_s27  ;;  %s596_s27 = scalar_lea.vmem [#allocation6], %s2037_s24 }
 0x47e   : > { %s1945_s2 = sshll.u32 %s596_s27, 4  ;;  %s3018_s2 = int_to_ptr.vmem [resolvable:$true] %s1945_s2 }
 0x47f   : > { %s2283_s4 = scalar_lea.vmem %s3018_s2, 512 }
 0x480   : > { %1561 = vrot.lane.b32.xlu0 %v2076_v31, %s3144_s1  ;;  %p2284_p5 = scmp.ne.s32.totalorder %s3018_s2, %s2283_s4 }
 0x481   : > { %1691 = vrot.lane.b32.xlu1 %v2076_v31, %s3145_s3  ;;  %s2365_s3 = smov [#allocation6]  }
 0x482   : > { %p2285_p10 = pnand %p2284_p5, %p3150_p9  ;;  %s2287_s1 = sshll.u32 %s2365_s3, 4  ;;  %s2288_s1 = int_to_ptr.vmem [resolvable:$false] %s2287_s1 }
 0x483   : > { %s2289_s22 = scalar_lea.vmem %s2288_s1, 1024  ;;  %p2290_p2 = scmp.lt.s32.totalorder %s3018_s2, %s2288_s1 }
 0x484   : > { %1813 = vperm.xlu0 %2188, %v622_v44   ;;  %p2286_p12 = pneg %p2285_p10  ;;  %p2291_p3 = scmp.lt.s32.totalorder %s2289_s22, %s2283_s4 }
 0x485   : > { %1747 = vperm.xlu1 %2189, %v616_v32  }
 0x486   : > { %p2292_p4 = por %p2291_p3, %p2290_p2 }
 0x488   : > { %736 = vperm.xlu0 %2188, %v629_v33   ;;  %p2293_p7 = pnand %p2292_p4, %p2286_p12 }
 0x489   : > { %741 = vperm.xlu1 %2189, %v630_v34  }
 0x4d2   : > { %v1511_v35 = vpop.permute.xlu0 %1510 }
 0x4d3   : > { %v1513_v36 = vpop.permute.xlu1 %1512 }
 0x4d4   : > { %v1514_v3 = vsel %vm801_vm4, %v1511_v35, %v1513_v36  ;;  %v1515_v37 = vsel %vm801_vm4, %v1513_v36, %v1511_v35 }
 0x4d5   : > { %v1516_v47 = vmul.f32 %v1515_v37, %v2674_v17  ;;  %v1517_v50 = vmul.f32 %v1514_v3, %v2678_v18 }
 0x4d6   : > { %v1519_v38 = vpop.permute.xlu0 %1518 }
 0x4d7   : > { %v1521_v43 = vpop.permute.xlu1 %1520 }
 0x4d8   : > { %v1522_v45 = vsel %vm818_vm5, %v1519_v38, %v1521_v43  ;;  %v1523_v46 = vsel %vm818_vm5, %v1521_v43, %v1519_v38 }
 0x4d9   : > { %v1524_v53 = vmul.f32 %v1523_v46, %v2684_v20  ;;  %v1525_v57 = vmul.f32 %v1522_v45, %v2687_v21 }
 0x4da   : > { %v1527_v58 = vpop.permute.xlu0 %1526 }
 0x4db   : > { %v1534_v59 = vpack.c.bf16 %v1524_v53, %v1516_v47  ;;  %v1529_v60 = vpop.permute.xlu1 %1528  ;;  %v1535_v51 = vpack.c.bf16 %v1525_v57, %v1517_v50 }
 0x4dc   : > { %v1530_v61 = vsel %vm835_vm8, %v1527_v58, %v1529_v60  ;;  %v1531_v62 = vsel %vm835_vm8, %v1529_v60, %v1527_v58 }
 0x4dd   : > { %v1532_v63 = vmul.f32 %v1531_v62, %v2724_v48  ;;  %v1533_v17 = vmul.f32 %v1530_v61, %v2731_v54  ;;  %1622 = vmatprep.subr.bf16.mxu1 %v1535_v51 }
 0x4de   : > { %v1539_v18 = vpop.permute.xlu0 %1538  ;;  %1623 = vmatpush1.bf16.msra.mxu1 %v1534_v59 }
 0x4df   : > { %v1536_v20 = vpack.c.bf16 %v1532_v63, %v1532_v63  ;;  %v1537_v52 = vpack.c.bf16 %v1533_v17, %v1533_v17  ;;  %v1541_v21 = vpop.permute.xlu1 %1540 }
 0x4e0   : > { %v1542_v4 = vsel %vm856_vm1, %v1539_v18, %v1541_v21  ;;  %v1543_v5 = vsel %vm856_vm1, %v1541_v21, %v1539_v18 }
 0x4e1   : > { %v1544_v8 = vmul.f32 %v1543_v5, %v2640_v55  ;;  %v1545_v10 = vmul.f32 %v1542_v4, %v2643_v56  ;;  %2079 = vmatprep.subr.msk.bf16.mxu1 %vm899_vm3, %v1537_v52  ;;  %v1617_v48 = vsel %vm899_vm3, %v1536_v20, 0 }
 0x4e2   : > { %v1547_v54 = vpop.permute.xlu0 %1546  ;;  %1625 = vmatpush1.bf16.msra.mxu1 %v1617_v48 }
 0x4e3   : > { %v1554_v12 = vpack.c.bf16 %v2870_v16, %v1544_v8  ;;  %v1549_v13 = vpop.permute.xlu1 %1548  ;;  %2083 = vmatprep.subr.msk.bf16.mxu1 %vm899_vm3, %v2882_v23  ;;  %v1555_v55 = vpack.c.bf16 %v2872_v19, %v1545_v10 }
 0x4e4   : > { %v1550_v56 = vsel %vm873_vm2, %v1547_v54, %v1549_v13  ;;  %v1551_v14 = vsel %vm873_vm2, %v1549_v13, %v1547_v54 }
 0x4e5   : > { %v1552_v15 = vmul.f32 %v1550_v56, %v2654_v0  ;;  %v1553_v22 = vmul.f32 %v1551_v14, %v2657_v2  ;;  %1572 = vmatprep.subr.bf16.mxu0 %v1555_v55  ;;  %2080 = vmatmul.mubr.msk.bf16.vlgmr.msra.gmra.mrb[16].mxu1 %vm895_vm9, %v615_v30 }
 0x4e6   : > { %1573 = vmatpush1.bf16.msra.mxu0 %v1554_v12  ;;  %v1664_v16 = vpop.permute.xlu0 %1663  ;;  %1757 = vmatpush1.bf16.msra.mxu1 %v2885_v24 }
 0x4e7   : > { %v1556_v19 = vpack.c.bf16 %v1552_v15, %v1552_v15  ;;  %v1557_v23 = vpack.c.bf16 %v1553_v22, %v1553_v22  ;;  %v1666_v27 = vpop.permute.xlu1 %1665  ;;  %1788 = vmatprep.mubr.bf16.mxu1 %v2352_v1 }
 0x4e8   : > { %v1668_v2 = vsel %vm1001_vm6, %v1666_v27, %v1664_v16  ;;  %v1667_v31 = vsel %vm1001_vm6, %v1664_v16, %v1666_v27 }
 0x4e9   : > { %2077 = vmatprep.subr.msk.bf16.mxu0 %vm899_vm3, %v1557_v23  ;;  %v1567_v0 = vsel %vm899_vm3, %v1556_v19, 0  ;;  %v1670_v44 = vmul.f32 %v1668_v2, %v2709_v40  ;;  %v1669_v3 = vmul.f32 %v1667_v31, %v2706_v39 }
 0x4ea   : > { %1575 = vmatpush1.bf16.msra.mxu0 %v1567_v0  ;;  %v1672_v26 = vpop.permute.xlu0 %1671 }
 0x4eb   : > { %v1674_v29 = vpop.permute.xlu1 %1673 }
 0x4ec   : > { %v1675_v30 = vsel %vm1018_vm7, %v1672_v26, %v1674_v29  ;;  %v1676_v24 = vsel %vm1018_vm7, %v1674_v29, %v1672_v26 }
 0x4ed   : > { %v1678_v32 = vmul.f32 %v1676_v24, %v2716_v42  ;;  %2084 = vmatmul.mubr.msk.bf16.vlgmr.msra.gmra.mrb[20].mxu1 %vm1390_vm13, %v1752_v28  ;;  %v1677_v33 = vmul.f32 %v1675_v30, %v2713_v41 }
 0x4ee   : > { %v1680_v34 = vpop.permute.xlu0 %1679  ;;  %1884 = vmatprep.mubr.bf16.mxu1 %v2352_v1 }
 0x4ef   : > { %v1682_v35 = vpop.permute.xlu1 %1681  ;;  %v1688_v36 = vpack.c.bf16 %v1678_v32, %v1670_v44  ;;  %v1687_v43 = vpack.c.bf16 %v1677_v33, %v1669_v3 }
 0x4f0   : > { %v1683_v37 = vsel %vm1035_vm10, %v1680_v34, %v1682_v35  ;;  %v1684_v38 = vsel %vm1035_vm10, %v1682_v35, %v1680_v34 }
 0x4f1   : > { %v1685_v40 = vmul.f32 %v2749_v6, %v1683_v37  ;;  %v1686_v42 = vmul.f32 %v2754_v7, %v1684_v38  ;;  %1702 = vmatprep.subr.bf16.mxu0 %v1688_v36  ;;  %v2198_v37 = vld [vmem:[%s3083_s16] sm:$0xff]  }
 0x4f2   : > { %v1562_v41 = vpop.permute.xlu0 %1561 }
 0x4f3   : > { %v1689_v45 = vpack.c.bf16 %v1685_v40, %v1685_v40  ;;  %v1690_v46 = vpack.c.bf16 %v1686_v42, %v1686_v42  ;;  %2078 = vmatmul.mubr.msk.bf16.vlgmr.msra.gmra.mrb[20].mxu0 %vm895_vm9, %v1562_v41  ;;  %v1692_v49 = vpop.permute.xlu1 %1691 }
 0x4f4   : > { %1703 = vmatpush1.bf16.msra.mxu0 %v1687_v43  ;;  %1734 = vmatprep.mubr.bf16.mxu0 %v2352_v1 }
 0x4f5   : > { %2081 = vmatprep.subr.msk.bf16.mxu0 %vm899_vm3, %v1690_v46  ;;  %v1697_v39 = vsel %vm899_vm3, %v1689_v45, 0 }
 0x4f8   : > { %1705 = vmatpush1.bf16.msra.mxu0 %v1697_v39 }
 0x4fb   : > { %2082 = vmatmul.mubr.msk.bf16.vlgmr.msra.gmra.mrb[24].mxu0 %vm895_vm9, %v1692_v49 }
 0x503   : > { %v1814_v48 = vpop.permute.xlu0 %1813 }
 0x504   : > { %v1819_v13 = vrot.slane %v1814_v48, %v2666_v9  ;;  %v1748_v9 = vpop.permute.xlu1 %1747 }
 0x507   : > { %v737_v38 = vpop.permute.xlu0 %736 }
 0x508   : > { %v742_v41 = vpop.permute.xlu1 %741 }
 0x5b8   : > { %v1656_v6 = vpop.f32.mrb[16].mxu1 }
 0x5b9   : > { %v1658_v7 = vpop.f32.mrb[17].mxu1 }
 0x5ba   : > { %v1660_v47 = vpop.f32.mrb[18].mxu1 }
 0x5bb   : > { %v1661_v50 = vpop.f32.mrb[19].mxu1 }
 0x5c0   : > { %v1790_v53 = vpop.f32.mrb[20].mxu1 }
 0x5c1   : > { %v1797_v57 = vrot.slane %v1790_v53, 4  ;;  %v1792_v58 = vpop.f32.mrb[21].mxu1 }
 0x5c2   : > { %v1803_v59 = vrot.slane %v1792_v58, 4  ;;  %v1794_v60 = vpop.f32.mrb[22].mxu1 }
 0x5c3   : > { %v1798_v51 = vmax.f32 %v1790_v53, %v1797_v57  ;;  %v1795_v61 = vpop.f32.mrb[23].mxu1 }
 0x5c4   : > { %v1804_v1 = vmax.f32 %v1792_v58, %v1803_v59 }
 0x5c5   : > { %v1799_v62 = vrot.slane %v1798_v51, 2 }
 0x5c6   : > { %v1805_v63 = vrot.slane %v1804_v1, 2  ;;  %v1606_v17 = vpop.f32.mrb[20].mxu0 }
 0x5c7   : > { %v1800_v18 = vmax.f32 %v1798_v51, %v1799_v62  ;;  %v1657_v20 = vadd.f32 %v1656_v6, %v1606_v17  ;;  %v1608_v52 = vpop.f32.mrb[21].mxu0 }
 0x5c8   : > { %v1806_v21 = vmax.f32 %v1804_v1, %v1805_v63  ;;  %v1659_v4 = vadd.f32 %v1658_v7, %v1608_v52  ;;  %v1610_v5 = vpop.f32.mrb[22].mxu0 }
 0x5c9   : > { %v1801_v8 = vrot.slane %v1800_v18, 1  ;;  %v1611_v10 = vpop.f32.mrb[23].mxu0 }
 0x5ca   : > { %v1807_v54 = vrot.slane %v1806_v21, 1 }
 0x5cb   : > { %v1802_v11 = vmax.f32 %v1800_v18, %v1801_v8 }
 0x5cc   : > { %v1808_v12 = vmax.f32 %v1806_v21, %v1807_v54 }
 0x5cd   : > { %v1809_v55 = vmul.f32 0.35355338, %v1802_v11 }
 0x5ce   : > { %v1810_v56 = vmul.f32 0.35355338, %v1808_v12  ;;  %v1736_v14 = vpop.f32.mrb[24].mxu0 }
 0x5cf   : > { %v1820_v15 = vadd.f32 %v1819_v13, %v1809_v55  ;;  %v1743_v22 = vadd.f32 %v1736_v14, %v1657_v20  ;;  %v1738_v25 = vpop.f32.mrb[25].mxu0 }
 0x5d0   : > { %v1821_v16 = vadd.f32 %v1819_v13, %v1810_v56  ;;  %v1744_v19 = vadd.f32 %v1738_v25, %v1659_v4  ;;  %v1740_v23 = vpop.f32.mrb[26].mxu0 }
 0x5d1   : > { %v2085_v27 = vmul.f32 -1.442695, %v1820_v15  ;;  %v1741_v28 = vpop.f32.mrb[27].mxu0  ;;  %v1750_v24 = vadd.f32 %v1748_v9, %v1743_v22 }
 0x5d2   : > { %v2086_v0 = vmul.f32 -1.442695, %v1821_v16  ;;  %v1751_v44 = vadd.f32 %v1748_v9, %v1744_v19 }
 0x5d3   : > { %2231 = vpow2.f32 %v2085_v27 }
 0x5d4   : > { %2233 = vpow2.f32 %v2086_v0 }
 0x5dd   : > { %v2232_v2 = vpop.eup %2231 }
 0x5de   : > { %v2234_v26 = vpop.eup %2233  ;;  %v1828_v29 = vadd.f32 1.0, %v2232_v2 }
 0x5df   : > { %v1829_v30 = vadd.f32 1.0, %v2234_v26 }
 0x5e0   : > { %2235 = vrcp.f32 %v1828_v29 }
 0x5e1   : > { %2237 = vrcp.f32 %v1829_v30 }
 0x5ea   : > { %v2236_v31 = vpop.eup %2235 }
 0x5eb   : > { %v2238_v32 = vpop.eup %2237  ;;  %v1834_v33 = vmul.f32 %v2236_v31, %v1750_v24 }
 0x5ec   : > { %v1835_v34 = vmul.f32 %v2238_v32, %v1751_v44 }
 0x5ed   : > { %v1836_v35 = vpack.c.bf16 %v1834_v33, %v1834_v33 }
 0x5ee   : > { %v1837_v36 = vpack.c.bf16 %v1835_v34, %v1835_v34 }
 0x5ef   : > { %v1847_v3 = vsel %vm899_vm3, %v1836_v35, 0 }
 0x5f0   : > { %2088 = vmatprep.subr.msk.bf16.mxu1 %vm899_vm3, %v1837_v36 }
 0x5f1   : > { %1853 = vmatpush1.bf16.msra.mxu1 %v1847_v3 }
 0x5f4   : > { %2089 = vmatmul.mubr.msk.bf16.vlgmr.msra.gmra.mrb[0].mxu1 %vm1390_vm13, %v2198_v37 }
 0x6c7   : > { %v1886_v40 = vpop.f32.mrb[0].mxu1 }
 0x6c8   : > { %v2112_v42 = vadd.f32 %v1886_v40, %v737_v38  ;;  %v1888_v43 = vpop.f32.mrb[1].mxu1 }
 0x6c9   : > { %v2113_v45 = vadd.f32 %v1888_v43, %v737_v38  ;;  %v1890_v46 = vpop.f32.mrb[2].mxu1 }
 0x6ca   : > { %v2090_v39 = vmul.f32 -1.442695, %v2112_v42  ;;  %v2114_v49 = vadd.f32 %v1890_v46, %v742_v41  ;;  %v1892_v6 = vpop.f32.mrb[3].mxu1 }
 0x6cb   : > { %v2091_v7 = vmul.f32 -1.442695, %v2113_v45  ;;  %v2115_v47 = vadd.f32 %v1892_v6, %v742_v41 }
 0x6cc   : > { %2239 = vpow2.f32 %v2090_v39  ;;  %v2092_v50 = vmul.f32 -1.442695, %v2114_v49 }
 0x6cd   : > { %2241 = vpow2.f32 %v2091_v7  ;;  %v2093_v53 = vmul.f32 -1.442695, %v2115_v47 }
 0x6ce   : > { %2243 = vpow2.f32 %v2092_v50 }
 0x6cf   : > { %2245 = vpow2.f32 %v2093_v53 }
 0x6d6   : > { %v2240_v57 = vpop.eup %2239 }
 0x6d7   : > { %v2242_v58 = vpop.eup %2241  ;;  %v1911_v59 = vadd.f32 1.0, %v2240_v57 }
 0x6d8   : > { %v2244_v60 = vpop.eup %2243  ;;  %v1912_v51 = vadd.f32 1.0, %v2242_v58 }
 0x6d9   : > { %v2246_v61 = vpop.eup %2245  ;;  %2247 = vrcp.f32 %v1911_v59  ;;  %v1913_v1 = vadd.f32 1.0, %v2244_v60 }
 0x6da   : > { %2249 = vrcp.f32 %v1912_v51  ;;  %v1914_v62 = vadd.f32 1.0, %v2246_v61 }
 0x6db   : > { %2251 = vrcp.f32 %v1913_v1 }
 0x6dc   : > { %2253 = vrcp.f32 %v1914_v62 }
 0x6e3   : > { %v2248_v63 = vpop.eup %2247 }
 0x6e4   : > { %v2250_v17 = vpop.eup %2249  ;;  %v1923_v18 = vmul.f32 %v2248_v63, %v2112_v42 }
 0x6e5   : > { %v2252_v20 = vpop.eup %2251  ;;  %v1924_v52 = vmul.f32 %v2250_v17, %v2113_v45 }
 0x6e6   : > { %v2254_v21 = vpop.eup %2253  ;;  %1927 = vst [vmem:[%s596_s27] sm:$0xff] %v1923_v18  ;;  %v1925_v4 = vmul.f32 %v2252_v20, %v2114_v49 }
 0x6e7   : > { %1928 = vst [vmem:[%s596_s27 + $0x8] sm:$0xff] %v1924_v52  ;;  %v1926_v5 = vmul.f32 %v2254_v21, %v2115_v47 }
 0x6e8   : > { %1929 = vst [vmem:[%s596_s27 + $0x10] sm:$0xff] %v1925_v4 }
 0x6e9   : > { %1930 = vst [vmem:[%s596_s27 + $0x18] sm:$0xff] %v1926_v5 }
 0x6ea   : > { %2296 = shalt.err (!%p2293_p7)
}
 0x6eb   : > { %s2297_s20 = scalar_lea.hbm %s3023_s6, 512  ;;  %s2301_s27 = scalar_lea.hbm %s3085_s18, 1024 }
 0x6ec   : > { %p2298_p8 = scmp.ne.s32.totalorder %s3023_s6, %s2297_s20  ;;  %p2302_p1 = scmp.lt.u32.totalorder %s3023_s6, %s3085_s18 }
 0x6ed   : > { %p2303_p0 = scmp.lt.u32.totalorder %s2301_s27, %s2297_s20  ;;  %p2305_p5 = scmp.lt.u32.totalorder %s2297_s20, %s3023_s6 }
 0x6ee   : > { %p2299_p11 = pnand %p2298_p8, %p3150_p9 }
 0x6ef   : > { %p2304_p6 = por %p2303_p0, %p2302_p1 }
 0x6f0   : > { %p2300_p13 = pneg %p2299_p11 }
 0x6f1   : > { %p2306_p10 = por %p2305_p5, %p2304_p6 }
 0x6f3   : > { %p2307_p12 = pnand %p2306_p10, %p2300_p13 }
 0x6f5   : > { %2310 = shalt.err (!%p2307_p12)
}
 0x6f6   : > { %s2366_s25 = smov 256  }
 0x6f7   : > { %2128 = dma.vmem_to_hbm [thread:$0]  (%p3150_p9), %s3018_s2, 512, %s3023_s6, %s3025_s13, %s2366_s25, %s2366_s25, %s3140_s0  }
 0x6f8 PF: > { %s3151_s4 = sld [smem:[#allocation12_spill]]  ;;  %p2140_p2 = scmp.ge.s32.totalorder %s2349_s19, 2 }
 0x6f9   : > { %s1960_s3 = sand.u32 1, %s2337_s29  }
 0x6fa   : > { %s1961_s1 = scalar_lea.sflag [#allocation5], %s1960_s3 }
 0x6fe   : > { %p3152_p3 = scmp.ne.s32.totalorder %s3151_s4, 0 }
 0x700   : > { %p2135_p4 = pnand %p2140_p2, %p3152_p3 }
 0x702   : > { %2332 = dma.done.wait (!%p2135_p4), %s1961_s1, 512  }
 0x703   : > { %2334 = vsyncadd (!%p2135_p4), %s1961_s1, 4294966784  ;;  %s3153_s19 = sld [smem:[#allocation10_spill]]  ;;  %s3154_s22 = sld [smem:[#allocation9_spill]] }
 0x704   : > { %s3155_s0 = sld [smem:[#allocation11_spill]]  ;;  %s3156_s29 = smov %s2341_s30 }
 0x709   : > { %p31_p7 = scmp.ge.s32.totalorder %s3153_s19, 4   ;;  %s3157_s30 = smov %s3154_s22 }
 0x70b   :  { %33 = sbr.rel (!%p31_p7) target bundleno = 12 (0xc), region = 135 }
 0x712   :  { %1966 = vsyncpa [#allocation4], 1 }
 0x713   :  { %1968 = vsyncpa [#allocation4 + $0x1], 1 }
 0x714   :  { %1969 = vsyncpa [#allocation5], 1 }
 0x715   :  { %1971 = vsyncpa [#allocation5 + $0x1], 1 }

</bundles_post_ra>
